<compile_context>
chip_gen: v6e
topology: v6e:2x2x1
jax: 0.10.0
libtpu: 0.0.40
codegen_flags: <defaults>
</compile_context>

<pallas_src>
import functools

import jax
import jax.numpy as jnp
import numpy as np
from jax import lax
from jax.experimental import pallas as pl
from jax.experimental.pallas import tpu as pltpu

NUM_CC_ITERS = 200      # matches connected_components(..., num_iterations=200)
CC_BLOCK = 8            # unrolled iterations between convergence checks (tunable 4/8/16)
assert NUM_CC_ITERS % CC_BLOCK == 0
NUM_CC_BLOCKS = NUM_CC_ITERS // CC_BLOCK


def _bce_dice_blob_kernel(x_ref, t_ref, xt_ref, out_ref, *, B, H, W):
    HW = H * W
    B2 = 2 * B

    # ---- BCE with logits (mean) + dice + thresholds, hoisted above the hot
    # ---- loop so x / t / e / sig die before the ~200 CCL iterations ---------
    x = x_ref[...]          # (B, H*W) float32
    t = t_ref[...]

    e = jnp.exp(-jnp.abs(x))
    # NOTE(review): jnp.log1p(e) matches the reference to the ulp; we keep
    # log(1+e) (difference ~1e-8 on the mean here, far below tolerance) to
    # stay on ops with long-verified Mosaic lowering.
    bce_elem = jnp.maximum(x, 0.0) - x * t + jnp.log(1.0 + e)
    bce = jnp.sum(bce_elem) / jnp.float32(B * HW)

    sig = jnp.where(x >= 0.0, 1.0, e) / (1.0 + e)        # == sigmoid(x)
    smooth = 1e-5
    inter = jnp.sum(sig * t, axis=1, keepdims=True)      # (B, 1)
    ssum = jnp.sum(sig, axis=1, keepdims=True)
    tsum = jnp.sum(t, axis=1, keepdims=True)
    dice = (2.0 * inter + smooth) / (ssum + tsum + smooth)
    dice_loss = 1.0 - jnp.sum(dice) / jnp.float32(B)

    # kornia thresholds: mask = img > img.max()/2 (global max per image stack)
    x_thr = jnp.max(x) * 0.5
    t_thr = jnp.max(t) * 0.5

    # ---- fused connected components on the stacked (2B, H*W) image ---------
    # Rows 0..B-1 hold the input image, rows B..2B-1 the target image (stacked
    # in the wrapper along the sublane axis). Lane rolls (axis 1) never mix
    # rows, so the 2B chains stay independent while sharing every instruction.
    xt = xt_ref[...]                                      # (2B, H*W) float32
    row2 = lax.broadcasted_iota(jnp.int32, (B2, HW), 0)
    col2 = lax.broadcasted_iota(jnp.int32, (B2, HW), 1)
    in_x = row2 < B                                       # x-chain rows

    thr = jnp.where(in_x, x_thr, t_thr)
    mask2 = xt > thr

    # Seeds reproduce torch.arange(B*H*W).view(B,1,H,W) per chain:
    # seed(b,h,w) = b*H*W + h*W + w  ->  (row mod B)*HW + lane.
    seed2 = jnp.where(in_x, row2, row2 - B) * HW + col2
    lab0 = jnp.where(mask2, seed2, 0)

    # Border masks: a lane roll wraps values across row boundaries / image
    # edges; those positions are forced to 0, the neutral element for the max
    # since every label is >= 0 (equivalent to zero padding).
    if (W & (W - 1)) == 0:                                # power-of-two fast path
        w_in = jnp.bitwise_and(col2, W - 1)
    else:
        w_in = col2 % W
    not_left = w_in != 0                                  # may receive from (h, w-1)
    not_right = w_in != (W - 1)                           # may receive from (h, w+1)
    not_top = col2 >= W                                   # may receive from (h-1, w)
    not_bot = col2 < (HW - W)                             # may receive from (h+1, w)

    def step(lab):
        # separable 3x3 max pool (zero padded): horizontal pass, vertical pass.
        # Roll amounts HW-1 / HW-W are the normalized forms of -1 / -W.
        frm_left = jnp.where(not_left, pltpu.roll(lab, 1, 1), 0)
        frm_right = jnp.where(not_right, pltpu.roll(lab, HW - 1, 1), 0)
        hmax = jnp.maximum(lab, jnp.maximum(frm_left, frm_right))
        frm_up = jnp.where(not_top, pltpu.roll(hmax, W, 1), 0)
        frm_dn = jnp.where(not_bot, pltpu.roll(hmax, HW - W, 1), 0)
        pooled = jnp.maximum(hmax, jnp.maximum(frm_up, frm_dn))
        # kornia update: out[mask] = max_pool(out)[mask]; background stays 0.
        return jnp.where(mask2, pooled, 0)

    def cc_cond(carry):
        blk, _, changed = carry
        return jnp.logical_and(blk < NUM_CC_BLOCKS, changed)

    def cc_body(carry):
        blk, lab, _ = carry
        prev = lab
        for _ in range(CC_BLOCK):          # unrolled for LLO visibility
            lab = step(lab)
        # Labels grow monotonically, so "no growth over a full block" is an
        # exact fixed-point test.  ONE reduction for both chains.
        changed = jnp.max(lab - prev) > 0
        return blk + jnp.int32(1), lab, changed

    _, lab, _ = lax.while_loop(
        cc_cond, cc_body, (jnp.int32(0), lab0, jnp.array(True)))

    # ---- numel(unique(labels)) per chain at the fixed point -----------------
    # Each component keeps exactly one pixel equal to its own (positive) seed,
    # plus one extra distinct value if 0 occurs (background / seed-0 pixel).
    own = jnp.logical_and(jnp.logical_and(mask2, lab == seed2), seed2 > 0)
    own_f = own.astype(jnp.float32)
    zero_f = (lab == 0).astype(jnp.float32)
    n_x = jnp.sum(jnp.where(in_x, own_f, 0.0))
    n_t = jnp.sum(jnp.where(in_x, 0.0, own_f))
    hz_x = jnp.max(jnp.where(in_x, zero_f, 0.0))
    hz_t = jnp.max(jnp.where(in_x, 0.0, zero_f))
    uniq_x = n_x + hz_x
    uniq_t = n_t + hz_t

    # ---- blob-number penalty -------------------------------------------------
    b_f = jnp.float32(B)
    pen = jnp.sqrt((uniq_x - 1.0) / uniq_t)
    pen = jnp.where(jnp.logical_or(jnp.isnan(pen), jnp.isinf(pen)), b_f, pen)
    pen = jnp.minimum(jnp.maximum(pen, 1.0), b_f)

    out_ref[0, 0] = 0.5 * (bce + dice_loss) + pen


def bce_dice_loss_blob_punish(inp, tgt):
    B, C, H, W = inp.shape
    assert C == 1, "connected_components requires a single-channel image"
    HW = H * W
    # (B,1,H,W) -> (B, H*W): free reshape; full image rows on the lane axis.
    x2 = inp.astype(jnp.float32).reshape(B, HW)
    t2 = tgt.astype(jnp.float32).reshape(B, HW)
    # Stack the two CCL chains along the sublane axis: (2B, H*W).
    xt = jnp.concatenate([x2, t2], axis=0)

    kernel = functools.partial(_bce_dice_blob_kernel, B=B, H=H, W=W)
    out = pl.pallas_call(
        kernel,
        out_shape=jax.ShapeDtypeStruct((1, 1), jnp.float32),
        in_specs=[
            pl.BlockSpec(memory_space=pltpu.MemorySpace.VMEM),
            pl.BlockSpec(memory_space=pltpu.MemorySpace.VMEM),
            pl.BlockSpec(memory_space=pltpu.MemorySpace.VMEM),
        ],
        out_specs=pl.BlockSpec(memory_space=pltpu.MemorySpace.SMEM),
    )(x2, t2, xt)
    return out[0, 0]


def _reference_loss(inp, tgt):
    """Pure-JAX re-implementation of the PyTorch module (self-check only)."""
    B, C, H, W = inp.shape
    x = inp.astype(jnp.float32)
    t = tgt.astype(jnp.float32)

    def ccl(img):
        mask = img > (jnp.max(img) * 0.5)
        seed = jnp.arange(B * C * H * W, dtype=jnp.int32).reshape(B, C, H, W)
        lab = jnp.where(mask, seed, 0)

        def pool3(a):
            p = jnp.pad(a, ((0, 0), (0, 0), (1, 1), (1, 1)))
            out = a
            for di in range(3):
                for dj in range(3):
                    out = jnp.maximum(out, p[:, :, di:di + H, dj:dj + W])
            return out

        def body(_, l):
            return jnp.where(mask, pool3(l), 0)

        return lax.fori_loop(0, NUM_CC_ITERS, body, lab)

    def n_unique(lab):
        v = jnp.sort(lab.reshape(-1))
        return 1.0 + jnp.sum((v[1:] != v[:-1]).astype(jnp.float32))

    uniq_x = n_unique(ccl(x))
    uniq_t = n_unique(ccl(t))
    pen = jnp.sqrt((uniq_x - 1.0) / uniq_t)
    pen = jnp.where(jnp.isnan(pen) | jnp.isinf(pen), float(B), pen)
    pen = jnp.clip(pen, 1.0, float(B))

    bce = jnp.mean(jnp.maximum(x, 0.0) - x * t + jnp.log1p(jnp.exp(-jnp.abs(x))))
    sig = jax.nn.sigmoid(x).reshape(B, -1)
    tf = t.reshape(B, -1)
    smooth = 1e-5
    dice = (2.0 * jnp.sum(sig * tf, axis=1) + smooth) / (
        jnp.sum(sig, axis=1) + jnp.sum(tf, axis=1) + smooth)
    dice_loss = 1.0 - jnp.sum(dice) / B
    return 0.5 * (bce + dice_loss) + pen


if __name__ == "__main__":
    key = jax.random.PRNGKey(0)
    k1, k2 = jax.random.split(key)
    B, C, H, W = 2, 1, 16, 16
    # Raw logits for `input`, binary mask for `target`.
    logits = 2.0 * jax.random.normal(k1, (B, C, H, W), dtype=jnp.float32)
    target = (jax.random.uniform(k2, (B, C, H, W)) > 0.7).astype(jnp.float32)

    loss = jax.jit(bce_dice_loss_blob_punish)(logits, target)
    jax.block_until_ready(loss)

    ref = jax.jit(_reference_loss)(logits, target)
    jax.block_until_ready(ref)
    np.testing.assert_allclose(np.asarray(loss), np.asarray(ref),
                               rtol=1e-4, atol=1e-4)

    print("KERNEL_OK")
</pallas_src>

<mosaic_0001>
module attributes {stable_mosaic.version = 11 : i64} {
  func.func @_bce_dice_blob_kernel(%arg0: memref<2x256xf32, #tpu.memory_space<vmem>>, %arg1: memref<2x256xf32, #tpu.memory_space<vmem>>, %arg2: memref<4x256xf32, #tpu.memory_space<vmem>>, %arg3: memref<1x1xf32, #tpu.memory_space<smem>>) attributes {dimension_semantics = [], scalar_prefetch = 0 : i64, scratch_operands = 0 : i64, tpu.core_type = #tpu.core_type<tc>} {
    %c0 = arith.constant 0 : index
    %c0_0 = arith.constant 0 : index
    %0 = vector.load %arg0[%c0, %c0_0] : memref<2x256xf32, #tpu.memory_space<vmem>>, vector<2x256xf32>
    %c0_1 = arith.constant 0 : index
    %c0_2 = arith.constant 0 : index
    %1 = vector.load %arg1[%c0_1, %c0_2] : memref<2x256xf32, #tpu.memory_space<vmem>>, vector<2x256xf32>
    %2 = math.absf %0 : vector<2x256xf32>
    %cst = arith.constant 0.000000e+00 : f32
    %3 = vector.broadcast %cst : f32 to vector<2x256xf32>
    %4 = arith.subf %3, %2 : vector<2x256xf32>
    %5 = math.exp %4 : vector<2x256xf32>
    %cst_3 = arith.constant 0.000000e+00 : f32
    %6 = vector.broadcast %cst_3 : f32 to vector<2x256xf32>
    %7 = arith.maximumf %0, %6 : vector<2x256xf32>
    %8 = arith.mulf %0, %1 : vector<2x256xf32>
    %9 = arith.subf %7, %8 : vector<2x256xf32>
    %cst_4 = arith.constant 1.000000e+00 : f32
    %10 = vector.broadcast %cst_4 : f32 to vector<2x256xf32>
    %11 = arith.addf %10, %5 : vector<2x256xf32>
    %12 = math.log %11 : vector<2x256xf32>
    %13 = arith.addf %9, %12 : vector<2x256xf32>
    %14 = vector.shape_cast %13 : vector<2x256xf32> to vector<1x2x256xf32>
    %cst_5 = arith.constant dense<0.000000e+00> : vector<1xf32>
    %15 = vector.multi_reduction <add>, %14, %cst_5 [1, 2] : vector<1x2x256xf32> to vector<1xf32>
    %16 = vector.shape_cast %15 : vector<1xf32> to vector<1x1x1xf32>
    %17 = vector.extract %16[0, 0, 0] : f32 from vector<1x1x1xf32>
    %cst_6 = arith.constant 5.120000e+02 : f32
    %18 = arith.divf %17, %cst_6 : f32
    %cst_7 = arith.constant 0.000000e+00 : f32
    %19 = vector.broadcast %cst_7 : f32 to vector<2x256xf32>
    %20 = arith.cmpf oge, %0, %19 : vector<2x256xf32>
    %cst_8 = arith.constant 1.000000e+00 : f32
    %21 = vector.broadcast %cst_8 : f32 to vector<2x256xf32>
    %22 = arith.select %20, %21, %5 : vector<2x256xi1>, vector<2x256xf32>
    %cst_9 = arith.constant 1.000000e+00 : f32
    %23 = vector.broadcast %cst_9 : f32 to vector<2x256xf32>
    %24 = arith.addf %23, %5 : vector<2x256xf32>
    %25 = arith.divf %22, %24 : vector<2x256xf32>
    %26 = arith.mulf %25, %1 : vector<2x256xf32>
    %cst_10 = arith.constant dense<0.000000e+00> : vector<2xf32>
    %27 = vector.multi_reduction <add>, %26, %cst_10 [1] : vector<2x256xf32> to vector<2xf32>
    %28 = vector.shape_cast %27 : vector<2xf32> to vector<2x1xf32>
    %cst_11 = arith.constant dense<0.000000e+00> : vector<2xf32>
    %29 = vector.multi_reduction <add>, %25, %cst_11 [1] : vector<2x256xf32> to vector<2xf32>
    %30 = vector.shape_cast %29 : vector<2xf32> to vector<2x1xf32>
    %cst_12 = arith.constant dense<0.000000e+00> : vector<2xf32>
    %31 = vector.multi_reduction <add>, %1, %cst_12 [1] : vector<2x256xf32> to vector<2xf32>
    %32 = vector.shape_cast %31 : vector<2xf32> to vector<2x1xf32>
    %cst_13 = arith.constant 2.000000e+00 : f32
    %33 = vector.broadcast %cst_13 : f32 to vector<2x1xf32>
    %34 = arith.mulf %33, %28 : vector<2x1xf32>
    %cst_14 = arith.constant 9.99999974E-6 : f32
    %35 = vector.broadcast %cst_14 : f32 to vector<2x1xf32>
    %36 = arith.addf %34, %35 : vector<2x1xf32>
    %37 = arith.addf %30, %32 : vector<2x1xf32>
    %cst_15 = arith.constant 9.99999974E-6 : f32
    %38 = vector.broadcast %cst_15 : f32 to vector<2x1xf32>
    %39 = arith.addf %37, %38 : vector<2x1xf32>
    %40 = arith.divf %36, %39 : vector<2x1xf32>
    %41 = vector.shape_cast %40 : vector<2x1xf32> to vector<1x2x1xf32>
    %cst_16 = arith.constant dense<0.000000e+00> : vector<1xf32>
    %42 = vector.multi_reduction <add>, %41, %cst_16 [1, 2] : vector<1x2x1xf32> to vector<1xf32>
    %43 = vector.shape_cast %42 : vector<1xf32> to vector<1x1x1xf32>
    %44 = vector.extract %43[0, 0, 0] : f32 from vector<1x1x1xf32>
    %cst_17 = arith.constant 2.000000e+00 : f32
    %45 = arith.divf %44, %cst_17 : f32
    %cst_18 = arith.constant 1.000000e+00 : f32
    %46 = arith.subf %cst_18, %45 : f32
    %47 = vector.shape_cast %0 : vector<2x256xf32> to vector<1x2x256xf32>
    %cst_19 = arith.constant dense<0xFF800000> : vector<1xf32>
    %48 = vector.multi_reduction <maximumf>, %47, %cst_19 [1, 2] : vector<1x2x256xf32> to vector<1xf32>
    %49 = vector.shape_cast %48 : vector<1xf32> to vector<1x1x1xf32>
    %50 = vector.extract %49[0, 0, 0] : f32 from vector<1x1x1xf32>
    %cst_20 = arith.constant 5.000000e-01 : f32
    %51 = arith.mulf %50, %cst_20 : f32
    %52 = vector.shape_cast %1 : vector<2x256xf32> to vector<1x2x256xf32>
    %cst_21 = arith.constant dense<0xFF800000> : vector<1xf32>
    %53 = vector.multi_reduction <maximumf>, %52, %cst_21 [1, 2] : vector<1x2x256xf32> to vector<1xf32>
    %54 = vector.shape_cast %53 : vector<1xf32> to vector<1x1x1xf32>
    %55 = vector.extract %54[0, 0, 0] : f32 from vector<1x1x1xf32>
    %cst_22 = arith.constant 5.000000e-01 : f32
    %56 = arith.mulf %55, %cst_22 : f32
    %c0_23 = arith.constant 0 : index
    %c0_24 = arith.constant 0 : index
    %57 = vector.load %arg2[%c0_23, %c0_24] : memref<4x256xf32, #tpu.memory_space<vmem>>, vector<4x256xf32>
    %58 = tpu.iota {dimensions = array<i32: 0>} : vector<4x256xi32>
    %59 = tpu.iota {dimensions = array<i32: 1>} : vector<4x256xi32>
    %c2_i32 = arith.constant 2 : i32
    %60 = vector.broadcast %c2_i32 : i32 to vector<4x256xi32>
    %61 = arith.cmpi slt, %58, %60 : vector<4x256xi32>
    %62 = vector.broadcast %51 : f32 to vector<4x256xf32>
    %63 = vector.broadcast %56 : f32 to vector<4x256xf32>
    %64 = arith.select %61, %62, %63 : vector<4x256xi1>, vector<4x256xf32>
    %65 = arith.cmpf ogt, %57, %64 : vector<4x256xf32>
    %c2_i32_25 = arith.constant 2 : i32
    %66 = vector.broadcast %c2_i32_25 : i32 to vector<4x256xi32>
    %67 = arith.subi %58, %66 : vector<4x256xi32>
    %68 = arith.select %61, %58, %67 : vector<4x256xi1>, vector<4x256xi32>
    %c256_i32 = arith.constant 256 : i32
    %69 = vector.broadcast %c256_i32 : i32 to vector<4x256xi32>
    %70 = arith.muli %68, %69 : vector<4x256xi32>
    %71 = arith.addi %70, %59 : vector<4x256xi32>
    %c0_i32 = arith.constant 0 : i32
    %72 = vector.broadcast %c0_i32 : i32 to vector<4x256xi32>
    %73 = arith.select %65, %71, %72 : vector<4x256xi1>, vector<4x256xi32>
    %c15_i32 = arith.constant 15 : i32
    %74 = vector.broadcast %c15_i32 : i32 to vector<4x256xi32>
    %75 = arith.andi %59, %74 : vector<4x256xi32>
    %c0_i32_26 = arith.constant 0 : i32
    %76 = vector.broadcast %c0_i32_26 : i32 to vector<4x256xi32>
    %77 = arith.cmpi ne, %75, %76 : vector<4x256xi32>
    %c15_i32_27 = arith.constant 15 : i32
    %78 = vector.broadcast %c15_i32_27 : i32 to vector<4x256xi32>
    %79 = arith.cmpi ne, %75, %78 : vector<4x256xi32>
    %c16_i32 = arith.constant 16 : i32
    %80 = vector.broadcast %c16_i32 : i32 to vector<4x256xi32>
    %81 = arith.cmpi sge, %59, %80 : vector<4x256xi32>
    %c240_i32 = arith.constant 240 : i32
    %82 = vector.broadcast %c240_i32 : i32 to vector<4x256xi32>
    %83 = arith.cmpi slt, %59, %82 : vector<4x256xi32>
    %c0_i32_28 = arith.constant 0 : i32
    %true = arith.constant true
    %84:3 = scf.while (%arg4 = %c0_i32_28, %arg5 = %73, %arg6 = %true) : (i32, vector<4x256xi32>, i1) -> (i32, vector<4x256xi32>, i1) {
      %c25_i32 = arith.constant 25 : i32
      %136 = arith.cmpi slt, %arg4, %c25_i32 : i32
      %137 = arith.andi %136, %arg6 : i1
      scf.condition(%137) %arg4, %arg5, %arg6 : i32, vector<4x256xi32>, i1
    } do {
    ^bb0(%arg4: i32, %arg5: vector<4x256xi32>, %arg6: i1):
      %c1_i32 = arith.constant 1 : i32
      %136 = tpu.dynamic_rotate %arg5 by %c1_i32 dim 1 : vector<4x256xi32>, i32 -> vector<4x256xi32>
      %c0_i32_47 = arith.constant 0 : i32
      %137 = vector.broadcast %c0_i32_47 : i32 to vector<4x256xi32>
      %138 = arith.select %77, %136, %137 : vector<4x256xi1>, vector<4x256xi32>
      %c255_i32 = arith.constant 255 : i32
      %139 = tpu.dynamic_rotate %arg5 by %c255_i32 dim 1 : vector<4x256xi32>, i32 -> vector<4x256xi32>
      %c0_i32_48 = arith.constant 0 : i32
      %140 = vector.broadcast %c0_i32_48 : i32 to vector<4x256xi32>
      %141 = arith.select %79, %139, %140 : vector<4x256xi1>, vector<4x256xi32>
      %142 = arith.maxsi %138, %141 : vector<4x256xi32>
      %143 = arith.maxsi %arg5, %142 : vector<4x256xi32>
      %c16_i32_49 = arith.constant 16 : i32
      %144 = tpu.dynamic_rotate %143 by %c16_i32_49 dim 1 : vector<4x256xi32>, i32 -> vector<4x256xi32>
      %c0_i32_50 = arith.constant 0 : i32
      %145 = vector.broadcast %c0_i32_50 : i32 to vector<4x256xi32>
      %146 = arith.select %81, %144, %145 : vector<4x256xi1>, vector<4x256xi32>
      %c240_i32_51 = arith.constant 240 : i32
      %147 = tpu.dynamic_rotate %143 by %c240_i32_51 dim 1 : vector<4x256xi32>, i32 -> vector<4x256xi32>
      %c0_i32_52 = arith.constant 0 : i32
      %148 = vector.broadcast %c0_i32_52 : i32 to vector<4x256xi32>
      %149 = arith.select %83, %147, %148 : vector<4x256xi1>, vector<4x256xi32>
      %150 = arith.maxsi %146, %149 : vector<4x256xi32>
      %151 = arith.maxsi %143, %150 : vector<4x256xi32>
      %c0_i32_53 = arith.constant 0 : i32
      %152 = vector.broadcast %c0_i32_53 : i32 to vector<4x256xi32>
      %153 = arith.select %65, %151, %152 : vector<4x256xi1>, vector<4x256xi32>
      %c1_i32_54 = arith.constant 1 : i32
      %154 = tpu.dynamic_rotate %153 by %c1_i32_54 dim 1 : vector<4x256xi32>, i32 -> vector<4x256xi32>
      %c0_i32_55 = arith.constant 0 : i32
      %155 = vector.broadcast %c0_i32_55 : i32 to vector<4x256xi32>
      %156 = arith.select %77, %154, %155 : vector<4x256xi1>, vector<4x256xi32>
      %c255_i32_56 = arith.constant 255 : i32
      %157 = tpu.dynamic_rotate %153 by %c255_i32_56 dim 1 : vector<4x256xi32>, i32 -> vector<4x256xi32>
      %c0_i32_57 = arith.constant 0 : i32
      %158 = vector.broadcast %c0_i32_57 : i32 to vector<4x256xi32>
      %159 = arith.select %79, %157, %158 : vector<4x256xi1>, vector<4x256xi32>
      %160 = arith.maxsi %156, %159 : vector<4x256xi32>
      %161 = arith.maxsi %153, %160 : vector<4x256xi32>
      %c16_i32_58 = arith.constant 16 : i32
      %162 = tpu.dynamic_rotate %161 by %c16_i32_58 dim 1 : vector<4x256xi32>, i32 -> vector<4x256xi32>
      %c0_i32_59 = arith.constant 0 : i32
      %163 = vector.broadcast %c0_i32_59 : i32 to vector<4x256xi32>
      %164 = arith.select %81, %162, %163 : vector<4x256xi1>, vector<4x256xi32>
      %c240_i32_60 = arith.constant 240 : i32
      %165 = tpu.dynamic_rotate %161 by %c240_i32_60 dim 1 : vector<4x256xi32>, i32 -> vector<4x256xi32>
      %c0_i32_61 = arith.constant 0 : i32
      %166 = vector.broadcast %c0_i32_61 : i32 to vector<4x256xi32>
      %167 = arith.select %83, %165, %166 : vector<4x256xi1>, vector<4x256xi32>
      %168 = arith.maxsi %164, %167 : vector<4x256xi32>
      %169 = arith.maxsi %161, %168 : vector<4x256xi32>
      %c0_i32_62 = arith.constant 0 : i32
      %170 = vector.broadcast %c0_i32_62 : i32 to vector<4x256xi32>
      %171 = arith.select %65, %169, %170 : vector<4x256xi1>, vector<4x256xi32>
      %c1_i32_63 = arith.constant 1 : i32
      %172 = tpu.dynamic_rotate %171 by %c1_i32_63 dim 1 : vector<4x256xi32>, i32 -> vector<4x256xi32>
      %c0_i32_64 = arith.constant 0 : i32
      %173 = vector.broadcast %c0_i32_64 : i32 to vector<4x256xi32>
      %174 = arith.select %77, %172, %173 : vector<4x256xi1>, vector<4x256xi32>
      %c255_i32_65 = arith.constant 255 : i32
      %175 = tpu.dynamic_rotate %171 by %c255_i32_65 dim 1 : vector<4x256xi32>, i32 -> vector<4x256xi32>
      %c0_i32_66 = arith.constant 0 : i32
      %176 = vector.broadcast %c0_i32_66 : i32 to vector<4x256xi32>
      %177 = arith.select %79, %175, %176 : vector<4x256xi1>, vector<4x256xi32>
      %178 = arith.maxsi %174, %177 : vector<4x256xi32>
      %179 = arith.maxsi %171, %178 : vector<4x256xi32>
      %c16_i32_67 = arith.constant 16 : i32
      %180 = tpu.dynamic_rotate %179 by %c16_i32_67 dim 1 : vector<4x256xi32>, i32 -> vector<4x256xi32>
      %c0_i32_68 = arith.constant 0 : i32
      %181 = vector.broadcast %c0_i32_68 : i32 to vector<4x256xi32>
      %182 = arith.select %81, %180, %181 : vector<4x256xi1>, vector<4x256xi32>
      %c240_i32_69 = arith.constant 240 : i32
      %183 = tpu.dynamic_rotate %179 by %c240_i32_69 dim 1 : vector<4x256xi32>, i32 -> vector<4x256xi32>
      %c0_i32_70 = arith.constant 0 : i32
      %184 = vector.broadcast %c0_i32_70 : i32 to vector<4x256xi32>
      %185 = arith.select %83, %183, %184 : vector<4x256xi1>, vector<4x256xi32>
      %186 = arith.maxsi %182, %185 : vector<4x256xi32>
      %187 = arith.maxsi %179, %186 : vector<4x256xi32>
      %c0_i32_71 = arith.constant 0 : i32
      %188 = vector.broadcast %c0_i32_71 : i32 to vector<4x256xi32>
      %189 = arith.select %65, %187, %188 : vector<4x256xi1>, vector<4x256xi32>
      %c1_i32_72 = arith.constant 1 : i32
      %190 = tpu.dynamic_rotate %189 by %c1_i32_72 dim 1 : vector<4x256xi32>, i32 -> vector<4x256xi32>
      %c0_i32_73 = arith.constant 0 : i32
      %191 = vector.broadcast %c0_i32_73 : i32 to vector<4x256xi32>
      %192 = arith.select %77, %190, %191 : vector<4x256xi1>, vector<4x256xi32>
      %c255_i32_74 = arith.constant 255 : i32
      %193 = tpu.dynamic_rotate %189 by %c255_i32_74 dim 1 : vector<4x256xi32>, i32 -> vector<4x256xi32>
      %c0_i32_75 = arith.constant 0 : i32
      %194 = vector.broadcast %c0_i32_75 : i32 to vector<4x256xi32>
      %195 = arith.select %79, %193, %194 : vector<4x256xi1>, vector<4x256xi32>
      %196 = arith.maxsi %192, %195 : vector<4x256xi32>
      %197 = arith.maxsi %189, %196 : vector<4x256xi32>
      %c16_i32_76 = arith.constant 16 : i32
      %198 = tpu.dynamic_rotate %197 by %c16_i32_76 dim 1 : vector<4x256xi32>, i32 -> vector<4x256xi32>
      %c0_i32_77 = arith.constant 0 : i32
      %199 = vector.broadcast %c0_i32_77 : i32 to vector<4x256xi32>
      %200 = arith.select %81, %198, %199 : vector<4x256xi1>, vector<4x256xi32>
      %c240_i32_78 = arith.constant 240 : i32
      %201 = tpu.dynamic_rotate %197 by %c240_i32_78 dim 1 : vector<4x256xi32>, i32 -> vector<4x256xi32>
      %c0_i32_79 = arith.constant 0 : i32
      %202 = vector.broadcast %c0_i32_79 : i32 to vector<4x256xi32>
      %203 = arith.select %83, %201, %202 : vector<4x256xi1>, vector<4x256xi32>
      %204 = arith.maxsi %200, %203 : vector<4x256xi32>
      %205 = arith.maxsi %197, %204 : vector<4x256xi32>
      %c0_i32_80 = arith.constant 0 : i32
      %206 = vector.broadcast %c0_i32_80 : i32 to vector<4x256xi32>
      %207 = arith.select %65, %205, %206 : vector<4x256xi1>, vector<4x256xi32>
      %c1_i32_81 = arith.constant 1 : i32
      %208 = tpu.dynamic_rotate %207 by %c1_i32_81 dim 1 : vector<4x256xi32>, i32 -> vector<4x256xi32>
      %c0_i32_82 = arith.constant 0 : i32
      %209 = vector.broadcast %c0_i32_82 : i32 to vector<4x256xi32>
      %210 = arith.select %77, %208, %209 : vector<4x256xi1>, vector<4x256xi32>
      %c255_i32_83 = arith.constant 255 : i32
      %211 = tpu.dynamic_rotate %207 by %c255_i32_83 dim 1 : vector<4x256xi32>, i32 -> vector<4x256xi32>
      %c0_i32_84 = arith.constant 0 : i32
      %212 = vector.broadcast %c0_i32_84 : i32 to vector<4x256xi32>
      %213 = arith.select %79, %211, %212 : vector<4x256xi1>, vector<4x256xi32>
      %214 = arith.maxsi %210, %213 : vector<4x256xi32>
      %215 = arith.maxsi %207, %214 : vector<4x256xi32>
      %c16_i32_85 = arith.constant 16 : i32
      %216 = tpu.dynamic_rotate %215 by %c16_i32_85 dim 1 : vector<4x256xi32>, i32 -> vector<4x256xi32>
      %c0_i32_86 = arith.constant 0 : i32
      %217 = vector.broadcast %c0_i32_86 : i32 to vector<4x256xi32>
      %218 = arith.select %81, %216, %217 : vector<4x256xi1>, vector<4x256xi32>
      %c240_i32_87 = arith.constant 240 : i32
      %219 = tpu.dynamic_rotate %215 by %c240_i32_87 dim 1 : vector<4x256xi32>, i32 -> vector<4x256xi32>
      %c0_i32_88 = arith.constant 0 : i32
      %220 = vector.broadcast %c0_i32_88 : i32 to vector<4x256xi32>
      %221 = arith.select %83, %219, %220 : vector<4x256xi1>, vector<4x256xi32>
      %222 = arith.maxsi %218, %221 : vector<4x256xi32>
      %223 = arith.maxsi %215, %222 : vector<4x256xi32>
      %c0_i32_89 = arith.constant 0 : i32
      %224 = vector.broadcast %c0_i32_89 : i32 to vector<4x256xi32>
      %225 = arith.select %65, %223, %224 : vector<4x256xi1>, vector<4x256xi32>
      %c1_i32_90 = arith.constant 1 : i32
      %226 = tpu.dynamic_rotate %225 by %c1_i32_90 dim 1 : vector<4x256xi32>, i32 -> vector<4x256xi32>
      %c0_i32_91 = arith.constant 0 : i32
      %227 = vector.broadcast %c0_i32_91 : i32 to vector<4x256xi32>
      %228 = arith.select %77, %226, %227 : vector<4x256xi1>, vector<4x256xi32>
      %c255_i32_92 = arith.constant 255 : i32
      %229 = tpu.dynamic_rotate %225 by %c255_i32_92 dim 1 : vector<4x256xi32>, i32 -> vector<4x256xi32>
      %c0_i32_93 = arith.constant 0 : i32
      %230 = vector.broadcast %c0_i32_93 : i32 to vector<4x256xi32>
      %231 = arith.select %79, %229, %230 : vector<4x256xi1>, vector<4x256xi32>
      %232 = arith.maxsi %228, %231 : vector<4x256xi32>
      %233 = arith.maxsi %225, %232 : vector<4x256xi32>
      %c16_i32_94 = arith.constant 16 : i32
      %234 = tpu.dynamic_rotate %233 by %c16_i32_94 dim 1 : vector<4x256xi32>, i32 -> vector<4x256xi32>
      %c0_i32_95 = arith.constant 0 : i32
      %235 = vector.broadcast %c0_i32_95 : i32 to vector<4x256xi32>
      %236 = arith.select %81, %234, %235 : vector<4x256xi1>, vector<4x256xi32>
      %c240_i32_96 = arith.constant 240 : i32
      %237 = tpu.dynamic_rotate %233 by %c240_i32_96 dim 1 : vector<4x256xi32>, i32 -> vector<4x256xi32>
      %c0_i32_97 = arith.constant 0 : i32
      %238 = vector.broadcast %c0_i32_97 : i32 to vector<4x256xi32>
      %239 = arith.select %83, %237, %238 : vector<4x256xi1>, vector<4x256xi32>
      %240 = arith.maxsi %236, %239 : vector<4x256xi32>
      %241 = arith.maxsi %233, %240 : vector<4x256xi32>
      %c0_i32_98 = arith.constant 0 : i32
      %242 = vector.broadcast %c0_i32_98 : i32 to vector<4x256xi32>
      %243 = arith.select %65, %241, %242 : vector<4x256xi1>, vector<4x256xi32>
      %c1_i32_99 = arith.constant 1 : i32
      %244 = tpu.dynamic_rotate %243 by %c1_i32_99 dim 1 : vector<4x256xi32>, i32 -> vector<4x256xi32>
      %c0_i32_100 = arith.constant 0 : i32
      %245 = vector.broadcast %c0_i32_100 : i32 to vector<4x256xi32>
      %246 = arith.select %77, %244, %245 : vector<4x256xi1>, vector<4x256xi32>
      %c255_i32_101 = arith.constant 255 : i32
      %247 = tpu.dynamic_rotate %243 by %c255_i32_101 dim 1 : vector<4x256xi32>, i32 -> vector<4x256xi32>
      %c0_i32_102 = arith.constant 0 : i32
      %248 = vector.broadcast %c0_i32_102 : i32 to vector<4x256xi32>
      %249 = arith.select %79, %247, %248 : vector<4x256xi1>, vector<4x256xi32>
      %250 = arith.maxsi %246, %249 : vector<4x256xi32>
      %251 = arith.maxsi %243, %250 : vector<4x256xi32>
      %c16_i32_103 = arith.constant 16 : i32
      %252 = tpu.dynamic_rotate %251 by %c16_i32_103 dim 1 : vector<4x256xi32>, i32 -> vector<4x256xi32>
      %c0_i32_104 = arith.constant 0 : i32
      %253 = vector.broadcast %c0_i32_104 : i32 to vector<4x256xi32>
      %254 = arith.select %81, %252, %253 : vector<4x256xi1>, vector<4x256xi32>
      %c240_i32_105 = arith.constant 240 : i32
      %255 = tpu.dynamic_rotate %251 by %c240_i32_105 dim 1 : vector<4x256xi32>, i32 -> vector<4x256xi32>
      %c0_i32_106 = arith.constant 0 : i32
      %256 = vector.broadcast %c0_i32_106 : i32 to vector<4x256xi32>
      %257 = arith.select %83, %255, %256 : vector<4x256xi1>, vector<4x256xi32>
      %258 = arith.maxsi %254, %257 : vector<4x256xi32>
      %259 = arith.maxsi %251, %258 : vector<4x256xi32>
      %c0_i32_107 = arith.constant 0 : i32
      %260 = vector.broadcast %c0_i32_107 : i32 to vector<4x256xi32>
      %261 = arith.select %65, %259, %260 : vector<4x256xi1>, vector<4x256xi32>
      %c1_i32_108 = arith.constant 1 : i32
      %262 = tpu.dynamic_rotate %261 by %c1_i32_108 dim 1 : vector<4x256xi32>, i32 -> vector<4x256xi32>
      %c0_i32_109 = arith.constant 0 : i32
      %263 = vector.broadcast %c0_i32_109 : i32 to vector<4x256xi32>
      %264 = arith.select %77, %262, %263 : vector<4x256xi1>, vector<4x256xi32>
      %c255_i32_110 = arith.constant 255 : i32
      %265 = tpu.dynamic_rotate %261 by %c255_i32_110 dim 1 : vector<4x256xi32>, i32 -> vector<4x256xi32>
      %c0_i32_111 = arith.constant 0 : i32
      %266 = vector.broadcast %c0_i32_111 : i32 to vector<4x256xi32>
      %267 = arith.select %79, %265, %266 : vector<4x256xi1>, vector<4x256xi32>
      %268 = arith.maxsi %264, %267 : vector<4x256xi32>
      %269 = arith.maxsi %261, %268 : vector<4x256xi32>
      %c16_i32_112 = arith.constant 16 : i32
      %270 = tpu.dynamic_rotate %269 by %c16_i32_112 dim 1 : vector<4x256xi32>, i32 -> vector<4x256xi32>
      %c0_i32_113 = arith.constant 0 : i32
      %271 = vector.broadcast %c0_i32_113 : i32 to vector<4x256xi32>
      %272 = arith.select %81, %270, %271 : vector<4x256xi1>, vector<4x256xi32>
      %c240_i32_114 = arith.constant 240 : i32
      %273 = tpu.dynamic_rotate %269 by %c240_i32_114 dim 1 : vector<4x256xi32>, i32 -> vector<4x256xi32>
      %c0_i32_115 = arith.constant 0 : i32
      %274 = vector.broadcast %c0_i32_115 : i32 to vector<4x256xi32>
      %275 = arith.select %83, %273, %274 : vector<4x256xi1>, vector<4x256xi32>
      %276 = arith.maxsi %272, %275 : vector<4x256xi32>
      %277 = arith.maxsi %269, %276 : vector<4x256xi32>
      %c0_i32_116 = arith.constant 0 : i32
      %278 = vector.broadcast %c0_i32_116 : i32 to vector<4x256xi32>
      %279 = arith.select %65, %277, %278 : vector<4x256xi1>, vector<4x256xi32>
      %280 = arith.subi %279, %arg5 : vector<4x256xi32>
      %281 = vector.shape_cast %280 : vector<4x256xi32> to vector<1x4x256xi32>
      %cst_117 = arith.constant dense<-2147483648> : vector<1xi32>
      %282 = vector.multi_reduction <maxsi>, %281, %cst_117 [1, 2] : vector<1x4x256xi32> to vector<1xi32>
      %283 = vector.shape_cast %282 : vector<1xi32> to vector<1x1x1xi32>
      %284 = vector.extract %283[0, 0, 0] : i32 from vector<1x1x1xi32>
      %c0_i32_118 = arith.constant 0 : i32
      %285 = arith.cmpi sgt, %284, %c0_i32_118 : i32
      %c1_i32_119 = arith.constant 1 : i32
      %286 = arith.addi %arg4, %c1_i32_119 : i32
      scf.yield %286, %279, %285 : i32, vector<4x256xi32>, i1
    }
    %85 = arith.cmpi eq, %84#1, %71 : vector<4x256xi32>
    %86 = arith.andi %65, %85 : vector<4x256xi1>
    %c0_i32_29 = arith.constant 0 : i32
    %87 = vector.broadcast %c0_i32_29 : i32 to vector<4x256xi32>
    %88 = arith.cmpi sgt, %71, %87 : vector<4x256xi32>
    %89 = arith.andi %86, %88 : vector<4x256xi1>
    %90 = arith.extui %89 : vector<4x256xi1> to vector<4x256xi32>
    %91 = arith.sitofp %90 : vector<4x256xi32> to vector<4x256xf32>
    %c0_i32_30 = arith.constant 0 : i32
    %92 = vector.broadcast %c0_i32_30 : i32 to vector<4x256xi32>
    %93 = arith.cmpi eq, %84#1, %92 : vector<4x256xi32>
    %94 = arith.extui %93 : vector<4x256xi1> to vector<4x256xi32>
    %95 = arith.sitofp %94 : vector<4x256xi32> to vector<4x256xf32>
    %cst_31 = arith.constant 0.000000e+00 : f32
    %96 = vector.broadcast %cst_31 : f32 to vector<4x256xf32>
    %97 = arith.select %61, %91, %96 : vector<4x256xi1>, vector<4x256xf32>
    %98 = vector.shape_cast %97 : vector<4x256xf32> to vector<1x4x256xf32>
    %cst_32 = arith.constant dense<0.000000e+00> : vector<1xf32>
    %99 = vector.multi_reduction <add>, %98, %cst_32 [1, 2] : vector<1x4x256xf32> to vector<1xf32>
    %100 = vector.shape_cast %99 : vector<1xf32> to vector<1x1x1xf32>
    %101 = vector.extract %100[0, 0, 0] : f32 from vector<1x1x1xf32>
    %cst_33 = arith.constant 0.000000e+00 : f32
    %102 = vector.broadcast %cst_33 : f32 to vector<4x256xf32>
    %103 = arith.select %61, %102, %91 : vector<4x256xi1>, vector<4x256xf32>
    %104 = vector.shape_cast %103 : vector<4x256xf32> to vector<1x4x256xf32>
    %cst_34 = arith.constant dense<0.000000e+00> : vector<1xf32>
    %105 = vector.multi_reduction <add>, %104, %cst_34 [1, 2] : vector<1x4x256xf32> to vector<1xf32>
    %106 = vector.shape_cast %105 : vector<1xf32> to vector<1x1x1xf32>
    %107 = vector.extract %106[0, 0, 0] : f32 from vector<1x1x1xf32>
    %cst_35 = arith.constant 0.000000e+00 : f32
    %108 = vector.broadcast %cst_35 : f32 to vector<4x256xf32>
    %109 = arith.select %61, %95, %108 : vector<4x256xi1>, vector<4x256xf32>
    %110 = vector.shape_cast %109 : vector<4x256xf32> to vector<1x4x256xf32>
    %cst_36 = arith.constant dense<0xFF800000> : vector<1xf32>
    %111 = vector.multi_reduction <maximumf>, %110, %cst_36 [1, 2] : vector<1x4x256xf32> to vector<1xf32>
    %112 = vector.shape_cast %111 : vector<1xf32> to vector<1x1x1xf32>
    %113 = vector.extract %112[0, 0, 0] : f32 from vector<1x1x1xf32>
    %cst_37 = arith.constant 0.000000e+00 : f32
    %114 = vector.broadcast %cst_37 : f32 to vector<4x256xf32>
    %115 = arith.select %61, %114, %95 : vector<4x256xi1>, vector<4x256xf32>
    %116 = vector.shape_cast %115 : vector<4x256xf32> to vector<1x4x256xf32>
    %cst_38 = arith.constant dense<0xFF800000> : vector<1xf32>
    %117 = vector.multi_reduction <maximumf>, %116, %cst_38 [1, 2] : vector<1x4x256xf32> to vector<1xf32>
    %118 = vector.shape_cast %117 : vector<1xf32> to vector<1x1x1xf32>
    %119 = vector.extract %118[0, 0, 0] : f32 from vector<1x1x1xf32>
    %120 = arith.addf %101, %113 : f32
    %121 = arith.addf %107, %119 : f32
    %cst_39 = arith.constant 1.000000e+00 : f32
    %122 = arith.subf %120, %cst_39 : f32
    %123 = arith.divf %122, %121 : f32
    %124 = math.sqrt %123 : f32
    %125 = arith.cmpf one, %124, %124 : f32
    %126 = math.absf %124 : f32
    %cst_40 = arith.constant 0x7F800000 : f32
    %127 = arith.cmpf oeq, %126, %cst_40 : f32
    %128 = arith.ori %125, %127 : i1
    %cst_41 = arith.constant 2.000000e+00 : f32
    %129 = arith.select %128, %cst_41, %124 : f32
    %cst_42 = arith.constant 1.000000e+00 : f32
    %130 = arith.maximumf %129, %cst_42 : f32
    %cst_43 = arith.constant 2.000000e+00 : f32
    %131 = arith.minimumf %130, %cst_43 : f32
    %132 = arith.addf %18, %46 : f32
    %cst_44 = arith.constant 5.000000e-01 : f32
    %133 = arith.mulf %cst_44, %132 : f32
    %134 = arith.addf %133, %131 : f32
    %c0_45 = arith.constant 0 : index
    %c0_46 = arith.constant 0 : index
    %135 = memref.load %arg3[%c0_45, %c0_46] : memref<1x1xf32, #tpu.memory_space<smem>>
    memref.store %134, %arg3[%c0_45, %c0_46] : memref<1x1xf32, #tpu.memory_space<smem>>
    return
  }
}

</mosaic_0001>

<bundles_post_ra>
// kernel: bce_dice_loss_blob_punish.1
= control target key start
LH: loop header
LB: loop body
LE: loop exit
PB: predicated region body
PF: predicated region fallthrough
CT: control target
= control target key end

     0   :  { %s1339_s0 = inlined_call_operand.vmem [shape: f32[2,256], index: 0, kind: input, shape index: {}]   ;;  %s1340_s1 = inlined_call_operand.vmem [shape: f32[2,256], index: 1, kind: input, shape index: {}]   ;;  %s1341_s2 = inlined_call_operand.vmem [shape: f32[4,256], index: 2, kind: input, shape index: {}]   ;;  %s1342_s3 = inlined_call_operand.hbm [shape: f32[1,1], index: 3, kind: output, shape index: {}]  }
   0x1   :  { %v15_v0 = vld [vmem:[%s1339_s0] sm:$0xf] }
   0x2   :  { %v17_v1 = vand.u32 2147483647, %v15_v0 }
   0x3   :  { %8 = vsyncpa [#allocation3], 0  ;;  %v860_v6 = vmov 1983009808   ;;  %v32_v8 = vlaneseq  ;;  %vm55_vm0 = vcmp.ge.f32.partialorder %v15_v0, 0.0  ;;  %vm39_vm1 = vcmask 1041408  }
   0x4   :  { %v18_v2 = vsub.f32 0.0, %v17_v1  ;;  %v30_v7 = vunpack.c.l.s4 %v860_v6  ;;  %v16_v11 = vld [vmem:[%s1340_s1] sm:$0xf]  ;;  %v21_v32 = vmax.f32 %v15_v0, 0.0  ;;  %vm114_vm2 = vcmask 1024   ;;  %s974_s25 = smov 0  }
   0x5   :  { %v895_v10 = vshrl.u32 %v32_v8, 7  ;;  %v22_v33 = vmul.f32 %v16_v11, %v15_v0 }
   0x6   :  { %v19_v3 = vmul.f32 1.442695, %v18_v2  ;;  %v31_v9 = vunpack.c.0.s8 %v30_v7 }
   0x7   :  { %v23_v35 = vsub.f32 %v21_v32, %v22_v33  ;;  %vm172_vm9 = vcmp.lt.s32.totalorder %v895_v10, 2 }
   0x8   :  { %822 = vpow2.f32 %v19_v3  ;;  %v34_v12 = vsub.s32 %v31_v9, %v895_v10 }
   0xa   :  { %v99_v14 = vrot.slane %v16_v11, %v34_v12  ;;  %v136_v37 = vrot.slane %v15_v0, %v34_v12 }
   0xc   :  { %v100_v18 = vcombine.high %v99_v14, %v99_v14  ;;  %v103_v23 = vsel %vm39_vm1, %v99_v14, 0.0  ;;  %v137_v40 = vcombine.high %v136_v37, %v136_v37  ;;  %v140_v44 = vsel %vm39_vm1, %v136_v37, -inf }
   0xd   :  { %v153_v57 = vsel %vm39_vm1, %v99_v14, -inf }
   0xe   :  { %v104_v25 = vsel %vm39_vm1, %v100_v18, 0.0  ;;  %v141_v45 = vsel %vm39_vm1, %v137_v40, -inf  ;;  %v154_v58 = vsel %vm39_vm1, %v100_v18, -inf }
   0xf   :  { %v105_v30 = vadd.f32 %v104_v25, %v103_v23  ;;  %v142_v47 = vmax.f32 %v140_v44, %v141_v45  ;;  %v155_v60 = vmax.f32 %v153_v57, %v154_v58  ;;  %v166_v45 = vld [vmem:[%s1341_s2] sm:$0xff] }
  0x15   :  { %v823_v4 = vpop.eup %822 }
  0x16   :  { %v24_v5 = vadd.f32 1.0, %v823_v4  ;;  %v56_v13 = vsel %vm55_vm0, 1.0, %v823_v4  ;;  %v917_v4 = vand.u32 127, %v32_v8 }
  0x18   :  { %824 = vrcp.f32 %v24_v5  ;;  %v193_v6 = vand.u32 15, %v917_v4  ;;  %vm199_vm3 = vcmp.ge.s32.totalorder %v917_v4, 16 }
  0x19   :  { %826 = vlog2.f32 %v24_v5  ;;  %v920_v5 = vadd.s32 128, %v917_v4 }
  0x1a   :  { %vm926_vm5 = vcmp.ne.s32.totalorder %v193_v6, 0  ;;  %vm934_vm7 = vcmp.ne.s32.totalorder %v193_v6, 15 }
  0x1b   :  { %v194_v7 = vand.u32 15, %v920_v5  ;;  %vm202_vm4 = vcmp.lt.s32.totalorder %v920_v5, 240 }
  0x1d   :  { %vm930_vm6 = vcmp.ne.s32.totalorder %v194_v7, 0  ;;  %vm938_vm8 = vcmp.ne.s32.totalorder %v194_v7, 15 }
  0x25   :  { %v825_v15 = vpop.eup %824 }
  0x26   :  { %v58_v16 = vmul.f32 %v825_v15, %v56_v13  ;;  %v827_v34 = vpop.eup %826 }
  0x27   :  { %v26_v36 = vmul.f32 0.6931472, %v827_v34  ;;  %v769_v34 = vadd.s32 4294967294, %v895_v10 }
  0x28   :  { %v83_v17 = vrot.slane %v58_v16, %v34_v12  ;;  %v59_v19 = vmul.f32 %v58_v16, %v16_v11 }
  0x29   :  { %v27_v38 = vadd.f32 %v26_v36, %v23_v35  ;;  %v861_v35 = vmov 839922192   ;;  %v187_v37 = vsel %vm172_vm9, %v895_v10, %v769_v34 }
  0x2a   :  { %v84_v20 = vcombine.high %v83_v17, %v83_v17  ;;  %v87_v21 = vsel %vm39_vm1, %v83_v17, 0.0  ;;  %v67_v22 = vrot.slane %v59_v19, %v34_v12  ;;  %v178_v36 = vunpack.c.l.s4 %v861_v35 }
  0x2b   :  { %v35_v39 = vrot.slane %v27_v38, %v34_v12  ;;  %v188_v38 = vmul.u32 256, %v187_v37 }
  0x2c   :  { %v88_v24 = vsel %vm39_vm1, %v84_v20, 0.0  ;;  %v68_v26 = vcombine.high %v67_v22, %v67_v22  ;;  %v71_v27 = vsel %vm39_vm1, %v67_v22, 0.0 }
  0x2d   :  { %v89_v28 = vadd.f32 %v88_v24, %v87_v21  ;;  %v36_v41 = vcombine.high %v35_v39, %v35_v39  ;;  %v40_v42 = vsel %vm39_vm1, %v35_v39, 0.0  ;;  %v179_v39 = vunpack.c.0.s8 %v178_v36 }
  0x2e   :  { %v72_v29 = vsel %vm39_vm1, %v68_v26, 0.0  ;;  %v950_v40 = vadd.s32 %v188_v38, %v917_v4 }
  0x2f   :  { %90 = vadd.xlane.f32.xlu0 %v89_v28  ;;  %v73_v31 = vadd.f32 %v72_v29, %v71_v27  ;;  %v41_v43 = vsel %vm39_vm1, %v36_v41, 0.0  ;;  %v953_v41 = vadd.s32 %v188_v38, %v920_v5 }
  0x30   :  { %v42_v46 = vadd.f32 %v41_v43, %v40_v42  ;;  %v182_v42 = vsub.s32 %v179_v39, %v895_v10 }
  0x31   :  { %74 = vadd.xlane.f32.xlu1 %v73_v31 }
  0x33   :  { %106 = vadd.xlane.f32.xlu0 %v105_v30 }
  0x35   :  { %43 = vadd.xlane.f32.xlu1 %v42_v46 }
  0x39   :  { %143 = vmax.xlane.f32.xlu1 %v142_v47  ;;  %v963_v47 = vcombine.low %v950_v40, %v953_v41 }
  0xb8   :  { %v91_v48 = vpop.xlane.xlu0 %90 }
  0xba   :  { %v75_v52 = vpop.xlane.xlu1 %74 }
  0xbb   :  { %v108_v53 = vmul.f32 2.0, %v75_v52 }
  0xbc   :  { %v107_v49 = vpop.xlane.xlu0 %106 }
  0xbd   :  { %v110_v50 = vadd.f32 %v107_v49, %v91_v48  ;;  %v109_v54 = vadd.f32 1e-05, %v108_v53 }
  0xbe   :  { %v44_v61 = vpop.xlane.xlu1 %43 }
  0xbf   :  { %v111_v51 = vadd.f32 1e-05, %v110_v50  ;;  %v45_v62 = vrot.slane %v44_v61, 4 }
  0xc1   :  { %828 = vrcp.f32 %v111_v51  ;;  %v46_v63 = vadd.f32 %v45_v62, %v44_v61 }
  0xc2   :  { %v144_v13 = vpop.xlane.xlu1 %143 }
  0xc3   :  { %v47_v0 = vrot.slane %v46_v63, 2  ;;  %v145_v14 = vrot.slane %v144_v13, 4 }
  0xc5   :  { %v48_v1 = vadd.f32 %v47_v0, %v46_v63  ;;  %v146_v15 = vmax.f32 %v144_v13, %v145_v14 }
  0xc7   :  { %v49_v2 = vrot.slane %v48_v1, 1  ;;  %v147_v16 = vrot.slane %v146_v15, 2 }
  0xc9   :  { %v50_v3 = vadd.f32 %v49_v2, %v48_v1  ;;  %v148_v20 = vmax.f32 %v146_v15, %v147_v16 }
  0xcb   :  { %773 = vpush %v50_v3  ;;  %v149_v26 = vrot.slane %v148_v20, 1 }
  0xcd   :  { %v150_v31 = vmax.f32 %v148_v20, %v149_v26 }
  0xce   :  { %v829_v55 = vpop.eup %828 }
  0xcf   :  { %v113_v56 = vmul.f32 %v829_v55, %v109_v54 }
  0xd1   :  { %v115_v59 = vsel %vm114_vm2, %v113_v56, 0.0 }
  0xd2   :  { %116 = vadd.xlane.f32.xlu0 %v115_v59 }
  0xd6   :  { %156 = vmax.xlane.f32.xlu0 %v155_v60 }
  0xfc   :  { %s913_s0 = spop %773 }
  0xfd   :  { %s54_s1 = smul.f32 0.001953125, %s913_s0 }
 0x15b   :  { %v117_v17 = vpop.xlane.xlu0 %116 }
 0x15c   :  { %v118_v18 = vrot.slane %v117_v17, 4 }
 0x15e   :  { %v119_v19 = vadd.f32 %v118_v18, %v117_v17 }
 0x15f   :  { %v157_v21 = vpop.xlane.xlu0 %156 }
 0x160   :  { %v120_v22 = vrot.slane %v119_v19, 2  ;;  %v158_v23 = vrot.slane %v157_v21, 4 }
 0x162   :  { %v159_v24 = vmax.f32 %v157_v21, %v158_v23  ;;  %v121_v25 = vadd.f32 %v120_v22, %v119_v19 }
 0x164   :  { %v160_v27 = vrot.slane %v159_v24, 2  ;;  %v122_v28 = vrot.slane %v121_v25, 1 }
 0x166   :  { %v161_v29 = vmax.f32 %v159_v24, %v160_v27  ;;  %v123_v30 = vadd.f32 %v122_v28, %v121_v25 }
 0x168   :  { %775 = vpush %v123_v30  ;;  %v162_v32 = vrot.slane %v161_v29, 1 }
 0x169   :  { %777 = vpush %v150_v31 }
 0x16a   :  { %v163_v33 = vmax.f32 %v161_v29, %v162_v32 }
 0x16c   :  { %779 = vpush %v163_v33 }
 0x199   :  { %s776_s16 = spop %775 }
 0x19a   :  { %s127_s17 = smul.f32 0.5, %s776_s16  ;;  %s778_s18 = spop %777 }
 0x19b   :  { %s152_s20 = smul.f32 0.5, %s778_s18 }
 0x19c   :  { %s947_s19 = ssub.f32 1.0, %s127_s17 }
 0x19d   :  { %s780_s21 = spop %779  ;;  %v173_v43 = vstv %s152_s20 }
 0x19e   :  { %s165_s22 = smul.f32 0.5, %s780_s21 }
 0x1a0   :  { %v174_v44 = vstv %s165_s22 }
 0x1a1   :  { %v175_v46 = vsel %vm172_vm9, %v173_v43, %v174_v44 }
 0x1a2   :  { %v183_v48 = vrot.slane %v175_v46, %v182_v42 }
 0x1a4   :  { %vm965_vm10 = vcmp.gt.f32.partialorder %v166_v45, %v183_v48 }
 0x1a5   :  { %v192_v50 = vsel %vm965_vm10, %v963_v47, 0  }
 0x1a6 LB: > { %s862_s2 = smov 127   ;;  %s863_s26 = smov 1   ;;  %v212_v51 = vcombine.high %v854_v50, %v854_v50  ;;  %vm226_vm11 = vcmp.lt.s32.totalorder %v917_v4, 127  ;;  %vm217_vm12 = vcmp.lt.s32.totalorder %v917_v4, 1  ;;  %vm243_vm0 = vcmp.lt.s32.totalorder %v917_v4, 16  ;;  %s858_s25 = sphi %s974_s25, %s640_s25   ;;  %v854_v50 = vphi %v192_v50, %v1353_v50  }
 0x1a7   : > { %222 = vrot.lane.b32.xlu1 %v854_v50, %s862_s2  ;;  %213 = vrot.lane.b32.xlu0 %v854_v50, %s863_s26  ;;  %s864_s27 = smov 16   ;;  %s865_s28 = smov 112   ;;  %vm252_vm1 = vcmp.lt.s32.totalorder %v917_v4, 112 }
 0x1a8   : > { %s640_s25 = sadd.s32 1, %s858_s25  }
 0x1a9   : > { %p207_p1 = scmp.lt.s32.totalorder %s640_s25, 25 }
 0x1ab   : > { %224 = vrot.lane.b32.xlu1 %v212_v51, %s862_s2  ;;  %215 = vrot.lane.b32.xlu0 %v212_v51, %s863_s26 }
 0x219   : > { %v223_v52 = vpop.permute.xlu1 %222  ;;  %v214_v53 = vpop.permute.xlu0 %213 }
 0x21d   : > { %v225_v54 = vpop.permute.xlu1 %224  ;;  %v216_v55 = vpop.permute.xlu0 %215 }
 0x21e   : > { %v227_v56 = vsel %vm226_vm11, %v223_v52, %v225_v54  ;;  %v228_v57 = vsel %vm226_vm11, %v225_v54, %v223_v52  ;;  %v218_v58 = vsel %vm217_vm12, %v214_v53, %v216_v55  ;;  %v219_v59 = vsel %vm217_vm12, %v216_v55, %v214_v53 }
 0x21f   : > { %v229_v60 = vsel %vm934_vm7, %v227_v56, 0  ;;  %v230_v61 = vsel %vm938_vm8, %v228_v57, 0  ;;  %v220_v62 = vsel %vm926_vm5, %v219_v59, 0  ;;  %v221_v63 = vsel %vm930_vm6, %v218_v58, 0 }
 0x220   : > { %vm231_vm13 = vcmp.gt.s32.totalorder %v220_v62, %v229_v60  ;;  %vm233_vm14 = vcmp.gt.s32.totalorder %v221_v63, %v230_v61 }
 0x221   : > { %v232_v0 = vsel %vm231_vm13, %v220_v62, %v229_v60  ;;  %v234_v1 = vsel %vm233_vm14, %v221_v63, %v230_v61 }
 0x222   : > { %v235_v2 = vcombine.low %v232_v0, %v234_v1 }
 0x224   : > { %vm236_vm15 = vcmp.gt.s32.totalorder %v854_v50, %v235_v2 }
 0x225   : > { %v237_v3 = vsel %vm236_vm15, %v854_v50, %v235_v2 }
 0x226   : > { %239 = vrot.lane.b32.xlu0 %v237_v3, %s864_s27  ;;  %v238_v6 = vcombine.high %v237_v3, %v237_v3 }
 0x228   : > { %241 = vrot.lane.b32.xlu1 %v238_v6, %s864_s27 }
 0x22a   : > { %248 = vrot.lane.b32.xlu0 %v237_v3, %s865_s28 }
 0x22c   : > { %250 = vrot.lane.b32.xlu1 %v238_v6, %s865_s28 }
 0x298   : > { %v240_v7 = vpop.permute.xlu0 %239 }
 0x29a   : > { %v242_v13 = vpop.permute.xlu1 %241 }
 0x29b   : > { %v245_v14 = vsel %vm243_vm0, %v242_v13, %v240_v7  ;;  %v244_v20 = vsel %vm243_vm0, %v240_v7, %v242_v13 }
 0x29c   : > { %v249_v15 = vpop.permute.xlu0 %248  ;;  %v246_v17 = vsel %vm199_vm3, %v245_v14, 0 }
 0x29e   : > { %v251_v16 = vpop.permute.xlu1 %250 }
 0x29f   : > { %v253_v18 = vsel %vm252_vm1, %v249_v15, %v251_v16  ;;  %v254_v19 = vsel %vm252_vm1, %v251_v16, %v249_v15 }
 0x2a0   : > { %v256_v21 = vsel %vm202_vm4, %v254_v19, 0  ;;  %vm257_vm2 = vcmp.gt.s32.totalorder %v246_v17, %v253_v18 }
 0x2a1   : > { %v258_v22 = vsel %vm257_vm2, %v246_v17, %v253_v18  ;;  %vm259_vm13 = vcmp.gt.s32.totalorder %v244_v20, %v256_v21 }
 0x2a2   : > { %v260_v23 = vsel %vm259_vm13, %v244_v20, %v256_v21 }
 0x2a3   : > { %v261_v24 = vcombine.low %v258_v22, %v260_v23 }
 0x2a5   : > { %vm262_vm14 = vcmp.gt.s32.totalorder %v237_v3, %v261_v24 }
 0x2a6   : > { %v263_v25 = vsel %vm262_vm14, %v237_v3, %v261_v24 }
 0x2a7   : > { %v264_v26 = vsel %vm965_vm10, %v263_v25, 0 }
 0x2a8   : > { %266 = vrot.lane.b32.xlu0 %v264_v26, %s863_s26  ;;  %v265_v27 = vcombine.high %v264_v26, %v264_v26 }
 0x2aa   : > { %268 = vrot.lane.b32.xlu1 %v265_v27, %s863_s26 }
 0x2ac   : > { %274 = vrot.lane.b32.xlu0 %v264_v26, %s862_s2 }
 0x2ae   : > { %276 = vrot.lane.b32.xlu1 %v265_v27, %s862_s2 }
 0x31a   : > { %v267_v28 = vpop.permute.xlu0 %266 }
 0x31c   : > { %v269_v29 = vpop.permute.xlu1 %268 }
 0x31d   : > { %v270_v30 = vsel %vm217_vm12, %v267_v28, %v269_v29  ;;  %v271_v31 = vsel %vm217_vm12, %v269_v29, %v267_v28 }
 0x31e   : > { %v275_v32 = vpop.permute.xlu0 %274  ;;  %v272_v36 = vsel %vm926_vm5, %v271_v31, 0  ;;  %v273_v37 = vsel %vm930_vm6, %v270_v30, 0 }
 0x320   : > { %v277_v33 = vpop.permute.xlu1 %276 }
 0x321   : > { %v278_v34 = vsel %vm226_vm11, %v275_v32, %v277_v33  ;;  %v279_v35 = vsel %vm226_vm11, %v277_v33, %v275_v32 }
 0x322   : > { %v280_v38 = vsel %vm934_vm7, %v278_v34, 0  ;;  %v281_v39 = vsel %vm938_vm8, %v279_v35, 0 }
 0x323   : > { %vm282_vm15 = vcmp.gt.s32.totalorder %v272_v36, %v280_v38  ;;  %vm284_vm2 = vcmp.gt.s32.totalorder %v273_v37, %v281_v39 }
 0x324   : > { %v283_v42 = vsel %vm282_vm15, %v272_v36, %v280_v38  ;;  %v285_v43 = vsel %vm284_vm2, %v273_v37, %v281_v39 }
 0x325   : > { %v286_v44 = vcombine.low %v283_v42, %v285_v43 }
 0x327   : > { %vm287_vm13 = vcmp.gt.s32.totalorder %v264_v26, %v286_v44 }
 0x328   : > { %v288_v45 = vsel %vm287_vm13, %v264_v26, %v286_v44 }
 0x329   : > { %290 = vrot.lane.b32.xlu0 %v288_v45, %s864_s27  ;;  %v289_v46 = vcombine.high %v288_v45, %v288_v45 }
 0x32b   : > { %292 = vrot.lane.b32.xlu1 %v289_v46, %s864_s27 }
 0x32d   : > { %298 = vrot.lane.b32.xlu0 %v288_v45, %s865_s28 }
 0x32f   : > { %300 = vrot.lane.b32.xlu1 %v289_v46, %s865_s28 }
 0x39b   : > { %v291_v48 = vpop.permute.xlu0 %290 }
 0x39d   : > { %v293_v51 = vpop.permute.xlu1 %292 }
 0x39e   : > { %v295_v52 = vsel %vm243_vm0, %v293_v51, %v291_v48  ;;  %v294_v58 = vsel %vm243_vm0, %v291_v48, %v293_v51 }
 0x39f   : > { %v299_v53 = vpop.permute.xlu0 %298  ;;  %v296_v55 = vsel %vm199_vm3, %v295_v52, 0 }
 0x3a1   : > { %v301_v54 = vpop.permute.xlu1 %300 }
 0x3a2   : > { %v302_v56 = vsel %vm252_vm1, %v299_v53, %v301_v54  ;;  %v303_v57 = vsel %vm252_vm1, %v301_v54, %v299_v53 }
 0x3a3   : > { %v305_v59 = vsel %vm202_vm4, %v303_v57, 0  ;;  %vm306_vm14 = vcmp.gt.s32.totalorder %v296_v55, %v302_v56 }
 0x3a4   : > { %v307_v60 = vsel %vm306_vm14, %v296_v55, %v302_v56  ;;  %vm308_vm15 = vcmp.gt.s32.totalorder %v294_v58, %v305_v59 }
 0x3a5   : > { %v309_v61 = vsel %vm308_vm15, %v294_v58, %v305_v59 }
 0x3a6   : > { %v310_v62 = vcombine.low %v307_v60, %v309_v61 }
 0x3a8   : > { %vm311_vm2 = vcmp.gt.s32.totalorder %v288_v45, %v310_v62 }
 0x3a9   : > { %v312_v63 = vsel %vm311_vm2, %v288_v45, %v310_v62 }
 0x3aa   : > { %v313_v0 = vsel %vm965_vm10, %v312_v63, 0 }
 0x3ab   : > { %315 = vrot.lane.b32.xlu0 %v313_v0, %s863_s26  ;;  %v314_v1 = vcombine.high %v313_v0, %v313_v0 }
 0x3ad   : > { %317 = vrot.lane.b32.xlu1 %v314_v1, %s863_s26 }
 0x3af   : > { %323 = vrot.lane.b32.xlu0 %v313_v0, %s862_s2 }
 0x3b1   : > { %325 = vrot.lane.b32.xlu1 %v314_v1, %s862_s2 }
 0x41d   : > { %v316_v2 = vpop.permute.xlu0 %315 }
 0x41f   : > { %v318_v3 = vpop.permute.xlu1 %317 }
 0x420   : > { %v319_v6 = vsel %vm217_vm12, %v316_v2, %v318_v3  ;;  %v320_v7 = vsel %vm217_vm12, %v318_v3, %v316_v2 }
 0x421   : > { %v324_v13 = vpop.permute.xlu0 %323  ;;  %v321_v17 = vsel %vm926_vm5, %v320_v7, 0  ;;  %v322_v18 = vsel %vm930_vm6, %v319_v6, 0 }
 0x423   : > { %v326_v14 = vpop.permute.xlu1 %325 }
 0x424   : > { %v327_v15 = vsel %vm226_vm11, %v324_v13, %v326_v14  ;;  %v328_v16 = vsel %vm226_vm11, %v326_v14, %v324_v13 }
 0x425   : > { %v329_v19 = vsel %vm934_vm7, %v327_v15, 0  ;;  %v330_v20 = vsel %vm938_vm8, %v328_v16, 0 }
 0x426   : > { %vm331_vm13 = vcmp.gt.s32.totalorder %v321_v17, %v329_v19  ;;  %vm333_vm14 = vcmp.gt.s32.totalorder %v322_v18, %v330_v20 }
 0x427   : > { %v332_v21 = vsel %vm331_vm13, %v321_v17, %v329_v19  ;;  %v334_v22 = vsel %vm333_vm14, %v322_v18, %v330_v20 }
 0x428   : > { %v335_v23 = vcombine.low %v332_v21, %v334_v22 }
 0x42a   : > { %vm336_vm15 = vcmp.gt.s32.totalorder %v313_v0, %v335_v23 }
 0x42b   : > { %v337_v24 = vsel %vm336_vm15, %v313_v0, %v335_v23 }
 0x42c   : > { %339 = vrot.lane.b32.xlu0 %v337_v24, %s864_s27  ;;  %v338_v25 = vcombine.high %v337_v24, %v337_v24 }
 0x42e   : > { %341 = vrot.lane.b32.xlu1 %v338_v25, %s864_s27 }
 0x430   : > { %347 = vrot.lane.b32.xlu0 %v337_v24, %s865_s28 }
 0x432   : > { %349 = vrot.lane.b32.xlu1 %v338_v25, %s865_s28 }
 0x49e   : > { %v340_v26 = vpop.permute.xlu0 %339 }
 0x4a0   : > { %v342_v27 = vpop.permute.xlu1 %341 }
 0x4a1   : > { %v344_v28 = vsel %vm243_vm0, %v342_v27, %v340_v26  ;;  %v343_v34 = vsel %vm243_vm0, %v340_v26, %v342_v27 }
 0x4a2   : > { %v348_v29 = vpop.permute.xlu0 %347  ;;  %v345_v31 = vsel %vm199_vm3, %v344_v28, 0 }
 0x4a4   : > { %v350_v30 = vpop.permute.xlu1 %349 }
 0x4a5   : > { %v351_v32 = vsel %vm252_vm1, %v348_v29, %v350_v30  ;;  %v352_v33 = vsel %vm252_vm1, %v350_v30, %v348_v29 }
 0x4a6   : > { %v354_v35 = vsel %vm202_vm4, %v352_v33, 0  ;;  %vm355_vm2 = vcmp.gt.s32.totalorder %v345_v31, %v351_v32 }
 0x4a7   : > { %v356_v36 = vsel %vm355_vm2, %v345_v31, %v351_v32  ;;  %vm357_vm13 = vcmp.gt.s32.totalorder %v343_v34, %v354_v35 }
 0x4a8   : > { %v358_v37 = vsel %vm357_vm13, %v343_v34, %v354_v35 }
 0x4a9   : > { %v359_v38 = vcombine.low %v356_v36, %v358_v37 }
 0x4ab   : > { %vm360_vm14 = vcmp.gt.s32.totalorder %v337_v24, %v359_v38 }
 0x4ac   : > { %v361_v39 = vsel %vm360_vm14, %v337_v24, %v359_v38 }
 0x4ad   : > { %v362_v42 = vsel %vm965_vm10, %v361_v39, 0 }
 0x4ae   : > { %364 = vrot.lane.b32.xlu0 %v362_v42, %s863_s26  ;;  %v363_v43 = vcombine.high %v362_v42, %v362_v42 }
 0x4b0   : > { %366 = vrot.lane.b32.xlu1 %v363_v43, %s863_s26 }
 0x4b2   : > { %372 = vrot.lane.b32.xlu0 %v362_v42, %s862_s2 }
 0x4b4   : > { %374 = vrot.lane.b32.xlu1 %v363_v43, %s862_s2 }
 0x520   : > { %v365_v44 = vpop.permute.xlu0 %364 }
 0x522   : > { %v367_v45 = vpop.permute.xlu1 %366 }
 0x523   : > { %v368_v46 = vsel %vm217_vm12, %v365_v44, %v367_v45  ;;  %v369_v48 = vsel %vm217_vm12, %v367_v45, %v365_v44 }
 0x524   : > { %v373_v51 = vpop.permute.xlu0 %372  ;;  %v370_v55 = vsel %vm926_vm5, %v369_v48, 0  ;;  %v371_v56 = vsel %vm930_vm6, %v368_v46, 0 }
 0x526   : > { %v375_v52 = vpop.permute.xlu1 %374 }
 0x527   : > { %v376_v53 = vsel %vm226_vm11, %v373_v51, %v375_v52  ;;  %v377_v54 = vsel %vm226_vm11, %v375_v52, %v373_v51 }
 0x528   : > { %v378_v57 = vsel %vm934_vm7, %v376_v53, 0  ;;  %v379_v58 = vsel %vm938_vm8, %v377_v54, 0 }
 0x529   : > { %vm380_vm15 = vcmp.gt.s32.totalorder %v370_v55, %v378_v57  ;;  %vm382_vm2 = vcmp.gt.s32.totalorder %v371_v56, %v379_v58 }
 0x52a   : > { %v381_v59 = vsel %vm380_vm15, %v370_v55, %v378_v57  ;;  %v383_v60 = vsel %vm382_vm2, %v371_v56, %v379_v58 }
 0x52b   : > { %v384_v61 = vcombine.low %v381_v59, %v383_v60 }
 0x52d   : > { %vm385_vm13 = vcmp.gt.s32.totalorder %v362_v42, %v384_v61 }
 0x52e   : > { %v386_v62 = vsel %vm385_vm13, %v362_v42, %v384_v61 }
 0x52f   : > { %388 = vrot.lane.b32.xlu0 %v386_v62, %s864_s27  ;;  %v387_v63 = vcombine.high %v386_v62, %v386_v62 }
 0x531   : > { %390 = vrot.lane.b32.xlu1 %v387_v63, %s864_s27 }
 0x533   : > { %396 = vrot.lane.b32.xlu0 %v386_v62, %s865_s28 }
 0x535   : > { %398 = vrot.lane.b32.xlu1 %v387_v63, %s865_s28 }
 0x5a1   : > { %v389_v0 = vpop.permute.xlu0 %388 }
 0x5a3   : > { %v391_v1 = vpop.permute.xlu1 %390 }
 0x5a4   : > { %v393_v2 = vsel %vm243_vm0, %v391_v1, %v389_v0  ;;  %v392_v15 = vsel %vm243_vm0, %v389_v0, %v391_v1 }
 0x5a5   : > { %v397_v3 = vpop.permute.xlu0 %396  ;;  %v394_v7 = vsel %vm199_vm3, %v393_v2, 0 }
 0x5a7   : > { %v399_v6 = vpop.permute.xlu1 %398 }
 0x5a8   : > { %v400_v13 = vsel %vm252_vm1, %v397_v3, %v399_v6  ;;  %v401_v14 = vsel %vm252_vm1, %v399_v6, %v397_v3 }
 0x5a9   : > { %v403_v16 = vsel %vm202_vm4, %v401_v14, 0  ;;  %vm404_vm14 = vcmp.gt.s32.totalorder %v394_v7, %v400_v13 }
 0x5aa   : > { %v405_v17 = vsel %vm404_vm14, %v394_v7, %v400_v13  ;;  %vm406_vm15 = vcmp.gt.s32.totalorder %v392_v15, %v403_v16 }
 0x5ab   : > { %v407_v18 = vsel %vm406_vm15, %v392_v15, %v403_v16 }
 0x5ac   : > { %v408_v19 = vcombine.low %v405_v17, %v407_v18 }
 0x5ae   : > { %vm409_vm2 = vcmp.gt.s32.totalorder %v386_v62, %v408_v19 }
 0x5af   : > { %v410_v20 = vsel %vm409_vm2, %v386_v62, %v408_v19 }
 0x5b0   : > { %v411_v21 = vsel %vm965_vm10, %v410_v20, 0 }
 0x5b1   : > { %413 = vrot.lane.b32.xlu0 %v411_v21, %s863_s26  ;;  %v412_v22 = vcombine.high %v411_v21, %v411_v21 }
 0x5b3   : > { %415 = vrot.lane.b32.xlu1 %v412_v22, %s863_s26 }
 0x5b5   : > { %421 = vrot.lane.b32.xlu0 %v411_v21, %s862_s2 }
 0x5b7   : > { %423 = vrot.lane.b32.xlu1 %v412_v22, %s862_s2 }
 0x623   : > { %v414_v23 = vpop.permute.xlu0 %413 }
 0x625   : > { %v416_v24 = vpop.permute.xlu1 %415 }
 0x626   : > { %v417_v25 = vsel %vm217_vm12, %v414_v23, %v416_v24  ;;  %v418_v26 = vsel %vm217_vm12, %v416_v24, %v414_v23 }
 0x627   : > { %v422_v27 = vpop.permute.xlu0 %421  ;;  %v419_v31 = vsel %vm926_vm5, %v418_v26, 0  ;;  %v420_v32 = vsel %vm930_vm6, %v417_v25, 0 }
 0x629   : > { %v424_v28 = vpop.permute.xlu1 %423 }
 0x62a   : > { %v425_v29 = vsel %vm226_vm11, %v422_v27, %v424_v28  ;;  %v426_v30 = vsel %vm226_vm11, %v424_v28, %v422_v27 }
 0x62b   : > { %v427_v33 = vsel %vm934_vm7, %v425_v29, 0  ;;  %v428_v34 = vsel %vm938_vm8, %v426_v30, 0 }
 0x62c   : > { %vm429_vm13 = vcmp.gt.s32.totalorder %v419_v31, %v427_v33  ;;  %vm431_vm14 = vcmp.gt.s32.totalorder %v420_v32, %v428_v34 }
 0x62d   : > { %v430_v35 = vsel %vm429_vm13, %v419_v31, %v427_v33  ;;  %v432_v36 = vsel %vm431_vm14, %v420_v32, %v428_v34 }
 0x62e   : > { %v433_v37 = vcombine.low %v430_v35, %v432_v36 }
 0x630   : > { %vm434_vm15 = vcmp.gt.s32.totalorder %v411_v21, %v433_v37 }
 0x631   : > { %v435_v38 = vsel %vm434_vm15, %v411_v21, %v433_v37 }
 0x632   : > { %437 = vrot.lane.b32.xlu0 %v435_v38, %s864_s27  ;;  %v436_v39 = vcombine.high %v435_v38, %v435_v38 }
 0x634   : > { %439 = vrot.lane.b32.xlu1 %v436_v39, %s864_s27 }
 0x636   : > { %445 = vrot.lane.b32.xlu0 %v435_v38, %s865_s28 }
 0x638   : > { %447 = vrot.lane.b32.xlu1 %v436_v39, %s865_s28 }
 0x6a4   : > { %v438_v42 = vpop.permute.xlu0 %437 }
 0x6a6   : > { %v440_v43 = vpop.permute.xlu1 %439 }
 0x6a7   : > { %v442_v44 = vsel %vm243_vm0, %v440_v43, %v438_v42  ;;  %v441_v53 = vsel %vm243_vm0, %v438_v42, %v440_v43 }
 0x6a8   : > { %v446_v45 = vpop.permute.xlu0 %445  ;;  %v443_v48 = vsel %vm199_vm3, %v442_v44, 0 }
 0x6aa   : > { %v448_v46 = vpop.permute.xlu1 %447 }
 0x6ab   : > { %v449_v51 = vsel %vm252_vm1, %v446_v45, %v448_v46  ;;  %v450_v52 = vsel %vm252_vm1, %v448_v46, %v446_v45 }
 0x6ac   : > { %v452_v54 = vsel %vm202_vm4, %v450_v52, 0  ;;  %vm453_vm2 = vcmp.gt.s32.totalorder %v443_v48, %v449_v51 }
 0x6ad   : > { %v454_v55 = vsel %vm453_vm2, %v443_v48, %v449_v51  ;;  %vm455_vm13 = vcmp.gt.s32.totalorder %v441_v53, %v452_v54 }
 0x6ae   : > { %v456_v56 = vsel %vm455_vm13, %v441_v53, %v452_v54 }
 0x6af   : > { %v457_v57 = vcombine.low %v454_v55, %v456_v56 }
 0x6b1   : > { %vm458_vm14 = vcmp.gt.s32.totalorder %v435_v38, %v457_v57 }
 0x6b2   : > { %v459_v58 = vsel %vm458_vm14, %v435_v38, %v457_v57 }
 0x6b3   : > { %v460_v59 = vsel %vm965_vm10, %v459_v58, 0 }
 0x6b4   : > { %462 = vrot.lane.b32.xlu0 %v460_v59, %s863_s26  ;;  %v461_v60 = vcombine.high %v460_v59, %v460_v59 }
 0x6b6   : > { %464 = vrot.lane.b32.xlu1 %v461_v60, %s863_s26 }
 0x6b8   : > { %470 = vrot.lane.b32.xlu0 %v460_v59, %s862_s2 }
 0x6ba   : > { %472 = vrot.lane.b32.xlu1 %v461_v60, %s862_s2 }
 0x726   : > { %v463_v61 = vpop.permute.xlu0 %462 }
 0x728   : > { %v465_v62 = vpop.permute.xlu1 %464 }
 0x729   : > { %v466_v63 = vsel %vm217_vm12, %v463_v61, %v465_v62  ;;  %v467_v0 = vsel %vm217_vm12, %v465_v62, %v463_v61 }
 0x72a   : > { %v471_v1 = vpop.permute.xlu0 %470  ;;  %v468_v7 = vsel %vm926_vm5, %v467_v0, 0  ;;  %v469_v13 = vsel %vm930_vm6, %v466_v63, 0 }
 0x72c   : > { %v473_v2 = vpop.permute.xlu1 %472 }
 0x72d   : > { %v474_v3 = vsel %vm226_vm11, %v471_v1, %v473_v2  ;;  %v475_v6 = vsel %vm226_vm11, %v473_v2, %v471_v1 }
 0x72e   : > { %v476_v14 = vsel %vm934_vm7, %v474_v3, 0  ;;  %v477_v15 = vsel %vm938_vm8, %v475_v6, 0 }
 0x72f   : > { %vm478_vm15 = vcmp.gt.s32.totalorder %v468_v7, %v476_v14  ;;  %vm480_vm2 = vcmp.gt.s32.totalorder %v469_v13, %v477_v15 }
 0x730   : > { %v479_v16 = vsel %vm478_vm15, %v468_v7, %v476_v14  ;;  %v481_v17 = vsel %vm480_vm2, %v469_v13, %v477_v15 }
 0x731   : > { %v482_v18 = vcombine.low %v479_v16, %v481_v17 }
 0x733   : > { %vm483_vm13 = vcmp.gt.s32.totalorder %v460_v59, %v482_v18 }
 0x734   : > { %v484_v19 = vsel %vm483_vm13, %v460_v59, %v482_v18 }
 0x735   : > { %486 = vrot.lane.b32.xlu0 %v484_v19, %s864_s27  ;;  %v485_v20 = vcombine.high %v484_v19, %v484_v19 }
 0x737   : > { %488 = vrot.lane.b32.xlu1 %v485_v20, %s864_s27 }
 0x739   : > { %494 = vrot.lane.b32.xlu0 %v484_v19, %s865_s28 }
 0x73b   : > { %496 = vrot.lane.b32.xlu1 %v485_v20, %s865_s28 }
 0x7a7   : > { %v487_v21 = vpop.permute.xlu0 %486 }
 0x7a9   : > { %v489_v22 = vpop.permute.xlu1 %488 }
 0x7aa   : > { %v491_v23 = vsel %vm243_vm0, %v489_v22, %v487_v21  ;;  %v490_v29 = vsel %vm243_vm0, %v487_v21, %v489_v22 }
 0x7ab   : > { %v495_v24 = vpop.permute.xlu0 %494  ;;  %v492_v26 = vsel %vm199_vm3, %v491_v23, 0 }
 0x7ad   : > { %v497_v25 = vpop.permute.xlu1 %496 }
 0x7ae   : > { %v498_v27 = vsel %vm252_vm1, %v495_v24, %v497_v25  ;;  %v499_v28 = vsel %vm252_vm1, %v497_v25, %v495_v24 }
 0x7af   : > { %v501_v30 = vsel %vm202_vm4, %v499_v28, 0  ;;  %vm502_vm14 = vcmp.gt.s32.totalorder %v492_v26, %v498_v27 }
 0x7b0   : > { %v503_v31 = vsel %vm502_vm14, %v492_v26, %v498_v27  ;;  %vm504_vm15 = vcmp.gt.s32.totalorder %v490_v29, %v501_v30 }
 0x7b1   : > { %v505_v32 = vsel %vm504_vm15, %v490_v29, %v501_v30 }
 0x7b2   : > { %v506_v33 = vcombine.low %v503_v31, %v505_v32 }
 0x7b4   : > { %vm507_vm2 = vcmp.gt.s32.totalorder %v484_v19, %v506_v33 }
 0x7b5   : > { %v508_v34 = vsel %vm507_vm2, %v484_v19, %v506_v33 }
 0x7b6   : > { %v509_v35 = vsel %vm965_vm10, %v508_v34, 0 }
 0x7b7   : > { %511 = vrot.lane.b32.xlu0 %v509_v35, %s863_s26  ;;  %v510_v36 = vcombine.high %v509_v35, %v509_v35 }
 0x7b9   : > { %513 = vrot.lane.b32.xlu1 %v510_v36, %s863_s26 }
 0x7bb   : > { %519 = vrot.lane.b32.xlu0 %v509_v35, %s862_s2 }
 0x7bd   : > { %521 = vrot.lane.b32.xlu1 %v510_v36, %s862_s2 }
 0x829   : > { %v512_v37 = vpop.permute.xlu0 %511 }
 0x82b   : > { %v514_v38 = vpop.permute.xlu1 %513 }
 0x82c   : > { %v515_v39 = vsel %vm217_vm12, %v512_v37, %v514_v38  ;;  %v516_v42 = vsel %vm217_vm12, %v514_v38, %v512_v37 }
 0x82d   : > { %v520_v43 = vpop.permute.xlu0 %519  ;;  %v517_v48 = vsel %vm926_vm5, %v516_v42, 0  ;;  %v518_v51 = vsel %vm930_vm6, %v515_v39, 0 }
 0x82f   : > { %v522_v44 = vpop.permute.xlu1 %521 }
 0x830   : > { %v523_v45 = vsel %vm226_vm11, %v520_v43, %v522_v44  ;;  %v524_v46 = vsel %vm226_vm11, %v522_v44, %v520_v43 }
 0x831   : > { %v525_v52 = vsel %vm934_vm7, %v523_v45, 0  ;;  %v526_v53 = vsel %vm938_vm8, %v524_v46, 0 }
 0x832   : > { %vm527_vm13 = vcmp.gt.s32.totalorder %v517_v48, %v525_v52  ;;  %vm529_vm14 = vcmp.gt.s32.totalorder %v518_v51, %v526_v53 }
 0x833   : > { %v528_v54 = vsel %vm527_vm13, %v517_v48, %v525_v52  ;;  %v530_v55 = vsel %vm529_vm14, %v518_v51, %v526_v53 }
 0x834   : > { %v531_v56 = vcombine.low %v528_v54, %v530_v55 }
 0x836   : > { %vm532_vm15 = vcmp.gt.s32.totalorder %v509_v35, %v531_v56 }
 0x837   : > { %v533_v57 = vsel %vm532_vm15, %v509_v35, %v531_v56 }
 0x838   : > { %535 = vrot.lane.b32.xlu0 %v533_v57, %s864_s27  ;;  %v534_v58 = vcombine.high %v533_v57, %v533_v57 }
 0x83a   : > { %537 = vrot.lane.b32.xlu1 %v534_v58, %s864_s27 }
 0x83c   : > { %543 = vrot.lane.b32.xlu0 %v533_v57, %s865_s28 }
 0x83e   : > { %545 = vrot.lane.b32.xlu1 %v534_v58, %s865_s28 }
 0x8aa   : > { %v536_v59 = vpop.permute.xlu0 %535 }
 0x8ac   : > { %v538_v60 = vpop.permute.xlu1 %537 }
 0x8ad   : > { %v540_v61 = vsel %vm243_vm0, %v538_v60, %v536_v59  ;;  %v539_v3 = vsel %vm243_vm0, %v536_v59, %v538_v60 }
 0x8ae   : > { %v544_v62 = vpop.permute.xlu0 %543  ;;  %v541_v0 = vsel %vm199_vm3, %v540_v61, 0 }
 0x8b0   : > { %v546_v63 = vpop.permute.xlu1 %545 }
 0x8b1   : > { %v547_v1 = vsel %vm252_vm1, %v544_v62, %v546_v63  ;;  %v548_v2 = vsel %vm252_vm1, %v546_v63, %v544_v62 }
 0x8b2   : > { %v550_v6 = vsel %vm202_vm4, %v548_v2, 0  ;;  %vm551_vm2 = vcmp.gt.s32.totalorder %v541_v0, %v547_v1 }
 0x8b3   : > { %v552_v7 = vsel %vm551_vm2, %v541_v0, %v547_v1  ;;  %vm553_vm13 = vcmp.gt.s32.totalorder %v539_v3, %v550_v6 }
 0x8b4   : > { %v554_v13 = vsel %vm553_vm13, %v539_v3, %v550_v6 }
 0x8b5   : > { %v555_v14 = vcombine.low %v552_v7, %v554_v13 }
 0x8b7   : > { %vm556_vm14 = vcmp.gt.s32.totalorder %v533_v57, %v555_v14 }
 0x8b8   : > { %v557_v15 = vsel %vm556_vm14, %v533_v57, %v555_v14 }
 0x8b9   : > { %v558_v16 = vsel %vm965_vm10, %v557_v15, 0 }
 0x8ba   : > { %560 = vrot.lane.b32.xlu0 %v558_v16, %s863_s26  ;;  %v559_v17 = vcombine.high %v558_v16, %v558_v16 }
 0x8bc   : > { %562 = vrot.lane.b32.xlu1 %v559_v17, %s863_s26 }
 0x8be   : > { %568 = vrot.lane.b32.xlu0 %v558_v16, %s862_s2 }
 0x8c0   : > { %570 = vrot.lane.b32.xlu1 %v559_v17, %s862_s2 }
 0x92c   : > { %v561_v18 = vpop.permute.xlu0 %560 }
 0x92e   : > { %v563_v19 = vpop.permute.xlu1 %562 }
 0x92f   : > { %v564_v20 = vsel %vm217_vm12, %v561_v18, %v563_v19  ;;  %v565_v21 = vsel %vm217_vm12, %v563_v19, %v561_v18 }
 0x930   : > { %v569_v22 = vpop.permute.xlu0 %568  ;;  %v566_v26 = vsel %vm926_vm5, %v565_v21, 0  ;;  %v567_v27 = vsel %vm930_vm6, %v564_v20, 0 }
 0x932   : > { %v571_v23 = vpop.permute.xlu1 %570 }
 0x933   : > { %v572_v24 = vsel %vm226_vm11, %v569_v22, %v571_v23  ;;  %v573_v25 = vsel %vm226_vm11, %v571_v23, %v569_v22 }
 0x934   : > { %v574_v28 = vsel %vm934_vm7, %v572_v24, 0  ;;  %v575_v29 = vsel %vm938_vm8, %v573_v25, 0 }
 0x935   : > { %vm576_vm12 = vcmp.gt.s32.totalorder %v566_v26, %v574_v28  ;;  %vm578_vm15 = vcmp.gt.s32.totalorder %v567_v27, %v575_v29 }
 0x936   : > { %v577_v30 = vsel %vm576_vm12, %v566_v26, %v574_v28  ;;  %v579_v31 = vsel %vm578_vm15, %v567_v27, %v575_v29 }
 0x937   : > { %v580_v32 = vcombine.low %v577_v30, %v579_v31 }
 0x939   : > { %vm581_vm2 = vcmp.gt.s32.totalorder %v558_v16, %v580_v32 }
 0x93a   : > { %v582_v33 = vsel %vm581_vm2, %v558_v16, %v580_v32 }
 0x93b   : > { %584 = vrot.lane.b32.xlu0 %v582_v33, %s864_s27  ;;  %v583_v34 = vcombine.high %v582_v33, %v582_v33 }
 0x93d   : > { %586 = vrot.lane.b32.xlu1 %v583_v34, %s864_s27 }
 0x93f   : > { %592 = vrot.lane.b32.xlu0 %v582_v33, %s865_s28 }
 0x941   : > { %594 = vrot.lane.b32.xlu1 %v583_v34, %s865_s28 }
 0x9ad   : > { %v585_v35 = vpop.permute.xlu0 %584 }
 0x9af   : > { %v587_v36 = vpop.permute.xlu1 %586 }
 0x9b0   : > { %v589_v37 = vsel %vm243_vm0, %v587_v36, %v585_v35  ;;  %v588_v45 = vsel %vm243_vm0, %v585_v35, %v587_v36 }
 0x9b1   : > { %v593_v38 = vpop.permute.xlu0 %592  ;;  %v590_v42 = vsel %vm199_vm3, %v589_v37, 0 }
 0x9b3   : > { %v595_v39 = vpop.permute.xlu1 %594 }
 0x9b4   : > { %v596_v43 = vsel %vm252_vm1, %v593_v38, %v595_v39  ;;  %v597_v44 = vsel %vm252_vm1, %v595_v39, %v593_v38  ;;  %vm610_vm1 = vcmask 1043456  }
 0x9b5   : > { %v599_v46 = vsel %vm202_vm4, %v597_v44, 0  ;;  %vm600_vm11 = vcmp.gt.s32.totalorder %v590_v42, %v596_v43 }
 0x9b6   : > { %v601_v48 = vsel %vm600_vm11, %v590_v42, %v596_v43  ;;  %vm602_vm13 = vcmp.gt.s32.totalorder %v588_v45, %v599_v46 }
 0x9b7   : > { %v603_v51 = vsel %vm602_vm13, %v588_v45, %v599_v46 }
 0x9b8   : > { %v604_v52 = vcombine.low %v601_v48, %v603_v51 }
 0x9ba   : > { %vm605_vm14 = vcmp.gt.s32.totalorder %v582_v33, %v604_v52 }
 0x9bb   : > { %v606_v53 = vsel %vm605_vm14, %v582_v33, %v604_v52 }
 0x9bc   : > { %v607_v54 = vsel %vm965_vm10, %v606_v53, 0  }
 0x9bd   : > { %v608_v55 = vsub.s32 %v607_v54, %v854_v50 }
 0x9bf   : > { %v609_v56 = vcombine.high %v608_v55, %v608_v55  ;;  %v611_v57 = vsel %vm610_vm1, %v608_v55, 2147483648 }
 0x9c1   : > { %v612_v58 = vsel %vm610_vm1, %v609_v56, 2147483648 }
 0x9c2   : > { %vm613_vm0 = vcmp.gt.s32.totalorder %v611_v57, %v612_v58 }
 0x9c3   : > { %v614_v59 = vsel %vm613_vm0, %v611_v57, %v612_v58 }
 0x9c4   : > { %v616_v60 = vshra.s32 %v614_v59, 16  ;;  %v615_v62 = vand.u32 65535, %v614_v59 }
 0x9c6   : > { %v618_v61 = vcvt.s32.f32 %v616_v60  ;;  %v617_v0 = vcvt.s32.f32 %v615_v62 }
 0x9c8   : > { %619 = vmax.xlane.f32.xlu0 %v618_v61 }
 0xa51   : > { %v620_v63 = vpop.xlane.xlu0 %619 }
 0xa52   : > { %vm621_vm12 = vcmp.eq.f32.partialorder %v618_v61, %v620_v63  ;;  %v626_v50 = vcvt.f32.s32 %v620_v63 }
 0xa53   : > { %v622_v1 = vsel %vm621_vm12, %v617_v0, -inf }
 0xa54   : > { %623 = vmax.xlane.f32.xlu1 %v622_v1  ;;  %v627_v3 = vshll.u32 %v626_v50, 16  ;;  %v1353_v50 = vmov %v607_v54 }
 0xadd   : > { %v624_v2 = vpop.xlane.xlu1 %623 }
 0xade   : > { %v625_v6 = vcvt.f32.s32 %v624_v2 }
 0xae0   : > { %v628_v7 = vadd.s32 %v627_v3, %v625_v6 }
 0xae2   : > { %v629_v13 = vrot.slane %v628_v7, 4 }
 0xae4   : > { %vm630_vm15 = vcmp.gt.s32.totalorder %v628_v7, %v629_v13 }
 0xae5   : > { %v631_v14 = vsel %vm630_vm15, %v628_v7, %v629_v13 }
 0xae6   : > { %v632_v15 = vrot.slane %v631_v14, 2 }
 0xae8   : > { %vm633_vm2 = vcmp.gt.s32.totalorder %v631_v14, %v632_v15 }
 0xae9   : > { %v634_v16 = vsel %vm633_vm2, %v631_v14, %v632_v15 }
 0xaea   : > { %v635_v17 = vrot.slane %v634_v16, 1 }
 0xaec   : > { %vm636_vm11 = vcmp.gt.s32.totalorder %v634_v16, %v635_v17 }
 0xaed   : > { %v637_v18 = vsel %vm636_vm11, %v634_v16, %v635_v17 }
 0xaee   : > { %781 = vpush %v637_v18 }
 0xb1f   : > { %s782_s29 = spop %781 }
 0xb20   : > { %p639_p0 = scmp.gt.s32.totalorder %s782_s29, 0 }
 0xb22   : > { %p208_p2 = pnand %p639_p0, %p207_p1 }
 0xb23   :  { %vm652_vm13 = vcmp.eq.s32.totalorder (%p208_p2), %v607_v54, 0  ;;  %vm643_vm14 = vcmp.gt.s32.totalorder (%p208_p2), %v950_v40, 0  ;;  %v866_v19 = vmov (%p208_p2), 0.0   ;;  %vm641_vm0 = vcmp.eq.s32.totalorder (%p208_p2), %v607_v54, %v963_v47  ;;  %s741_s13 = sadd.f32 (%p208_p2), %s947_s19, %s54_s1  ;;  %s868_s16 = smov (%p208_p2), 1.0  }
 0xb24   :  { %211 = sbr.rel (!%p208_p2) target bundleno = 422 (0x1a6), region = 40  ;;  %v771_v20 = vsel (%p208_p2), %vm652_vm13, 1.0, %v866_v19  ;;  %vm644_vm12 = vcmp.gt.s32.totalorder (%p208_p2), %v953_v41, 0  ;;  %v867_v24 = vmov (%p208_p2), 0   ;;  %vm642_vm3 = vmand (%p208_p2), %vm965_vm10, %vm641_vm0  ;;  %s869_s18 = smov (%p208_p2), 2.0  }
 0xb25   :  { %v688_v21 = vcombine.high (%p208_p2), %v771_v20, %v771_v20  ;;  %v690_v22 = vsel (%p208_p2), %vm172_vm9, %v771_v20, 0.0  ;;  %v704_v23 = vsel (%p208_p2), %vm172_vm9, 0.0, %v771_v20  ;;  %v645_v25 = vsel (%p208_p2), %vm643_vm14, 1, %v867_v24  ;;  %s742_s15 = smul.f32 (%p208_p2), 0.5, %s741_s13  ;;  %s870_s22 = smov (%p208_p2), [#allocation2]  }
 0xb26   :  { %v692_v26 = vsel (%p208_p2), %vm610_vm1, %v690_v22, -inf  ;;  %v646_v4 = vsel (%p208_p2), %vm644_vm12, 1, %v867_v24  ;;  %v706_v12 = vsel (%p208_p2), %vm610_vm1, %v704_v23, -inf }
 0xb27   :  { %v691_v5 = vsel (%p208_p2), %vm172_vm9, %v688_v21, 0.0  ;;  %v705_v9 = vsel (%p208_p2), %vm172_vm9, 0.0, %v688_v21  ;;  %v647_v11 = vcombine.low (%p208_p2), %v645_v25, %v646_v4 }
 0xb28   :  { %v693_v8 = vsel (%p208_p2), %vm610_vm1, %v691_v5, -inf  ;;  %v707_v40 = vsel (%p208_p2), %vm610_vm1, %v705_v9, -inf }
 0xb29   :  { %v694_v41 = vmax.f32 %v692_v26, %v693_v8  ;;  %vm648_vm4 = vcmp.ne.s32.totalorder %v647_v11, 0  ;;  %v708_v47 = vmax.f32 %v706_v12, %v707_v40 }
 0xb2a   :  { %vm649_vm5 = vmand %vm642_vm3, %vm648_vm4 }
 0xb2b   :  { %695 = vmax.xlane.f32.xlu1 %v694_v41  ;;  %v770_v27 = vsel %vm649_vm5, 1.0, %v866_v19 }
 0xb2c   :  { %v656_v28 = vcombine.high %v770_v27, %v770_v27  ;;  %v658_v29 = vsel %vm172_vm9, %v770_v27, 0.0  ;;  %v673_v49 = vsel %vm172_vm9, 0.0, %v770_v27 }
 0xb2d   :  { %v661_v30 = vsel %vm610_vm1, %v658_v29, 0.0  ;;  %v675_v34 = vsel %vm610_vm1, %v673_v49, 0.0 }
 0xb2e   :  { %v659_v31 = vsel %vm172_vm9, %v656_v28, 0.0  ;;  %v674_v32 = vsel %vm172_vm9, 0.0, %v656_v28 }
 0xb2f   :  { %709 = vmax.xlane.f32.xlu1 %v708_v47  ;;  %v662_v33 = vsel %vm610_vm1, %v659_v31, 0.0  ;;  %v676_v35 = vsel %vm610_vm1, %v674_v32, 0.0 }
 0xb30   :  { %v663_v36 = vadd.f32 %v662_v33, %v661_v30  ;;  %v677_v37 = vadd.f32 %v676_v35, %v675_v34 }
 0xb32   :  { %664 = vadd.xlane.f32.xlu0 %v663_v36 }
 0xb36   :  { %678 = vadd.xlane.f32.xlu0 %v677_v37 }
 0xbb4   :  { %v696_v38 = vpop.xlane.xlu1 %695 }
 0xbb5   :  { %v697_v39 = vrot.slane %v696_v38, 4 }
 0xbb7   :  { %v698_v44 = vmax.f32 %v696_v38, %v697_v39 }
 0xbb8   :  { %v710_v42 = vpop.xlane.xlu1 %709 }
 0xbb9   :  { %v711_v43 = vrot.slane %v710_v42, 4  ;;  %v699_v51 = vrot.slane %v698_v44, 2 }
 0xbbb   :  { %v665_v45 = vpop.xlane.xlu0 %664  ;;  %v712_v46 = vmax.f32 %v710_v42, %v711_v43  ;;  %v700_v58 = vmax.f32 %v698_v44, %v699_v51 }
 0xbbc   :  { %v666_v10 = vrot.slane %v665_v45, 4 }
 0xbbd   :  { %v713_v53 = vrot.slane %v712_v46, 2  ;;  %v701_v0 = vrot.slane %v700_v58, 1 }
 0xbbe   :  { %v667_v48 = vadd.f32 %v666_v10, %v665_v45 }
 0xbbf   :  { %v679_v52 = vpop.xlane.xlu0 %678  ;;  %v714_v59 = vmax.f32 %v712_v46, %v713_v53  ;;  %v702_v3 = vmax.f32 %v700_v58, %v701_v0 }
 0xbc0   :  { %v668_v54 = vrot.slane %v667_v48, 2  ;;  %v680_v55 = vrot.slane %v679_v52, 4 }
 0xbc1   :  { %v715_v50 = vrot.slane %v714_v59, 1 }
 0xbc2   :  { %v681_v56 = vadd.f32 %v680_v55, %v679_v52  ;;  %v669_v57 = vadd.f32 %v668_v54, %v667_v48 }
 0xbc3   :  { %v716_v6 = vmax.f32 %v714_v59, %v715_v50 }
 0xbc4   :  { %v682_v60 = vrot.slane %v681_v56, 2  ;;  %v670_v61 = vrot.slane %v669_v57, 1 }
 0xbc6   :  { %v683_v62 = vadd.f32 %v682_v60, %v681_v56  ;;  %v671_v63 = vadd.f32 %v670_v61, %v669_v57 }
 0xbc8   :  { %783 = vpush %v671_v63  ;;  %v684_v1 = vrot.slane %v683_v62, 1 }
 0xbca   :  { %v685_v2 = vadd.f32 %v684_v1, %v683_v62 }
 0xbcc   :  { %785 = vpush %v685_v2 }
 0xbcd   :  { %787 = vpush %v702_v3 }
 0xbce   :  { %789 = vpush %v716_v6 }
 0xbf9   :  { %s784_s30 = spop %783 }
 0xbfd   :  { %s786_s4 = spop %785 }
 0xbfe   :  { %s788_s5 = spop %787 }
 0xbff   :  { %s790_s6 = spop %789  ;;  %s718_s8 = sadd.f32 %s788_s5, %s784_s30 }
 0xc00   :  { %s719_s7 = sadd.f32 %s790_s6, %s786_s4 }
 0xc01   :  { %s772_s9 = sadd.f32 -1.0, %s718_s8 }
 0xc02   :  { %v721_v7 = vstv %s719_s7 }
 0xc03   :  { %830 = vrcp.f32 %v721_v7 }
 0xc10   :  { %v831_v13 = vpop.eup %830 }
 0xc11   :  { %791 = vpush %v831_v13 }
 0xc42   :  { %s792_s10 = spop %791 }
 0xc43   :  { %s724_s11 = smul.f32 %s792_s10, %s772_s9 }
 0xc45   :  { %v725_v14 = vstv %s724_s11 }
 0xc46   :  { %832 = vrsqrt.f32 %v725_v14  ;;  %vm728_vm6 = vcmp.eq.f32.partialorder %v725_v14, inf  ;;  %v731_v17 = vand.u32 2147483648, %v725_v14  ;;  %vm730_vm7 = vcmp.eq.f32.partialorder %v725_v14, 0.0 }
 0xc53   :  { %v833_v15 = vpop.eup %832 }
 0xc54   :  { %v727_v16 = vmul.f32 %v833_v15, %v725_v14 }
 0xc56   :  { %v729_v18 = vsel %vm728_vm6, %v725_v14, %v727_v16 }
 0xc57   :  { %v732_v19 = vsel %vm730_vm7, %v731_v17, %v729_v18 }
 0xc58   :  { %793 = vpush %v732_v19 }
 0xc89   :  { %s794_s12 = spop %793 }
 0xc8a   :  { %p734_p3 = scmp.ne.f32.partialorder %s794_s12, %s794_s12  ;;  %s735_s14 = sand.u32 2147483647, %s794_s12 }
 0xc8b   :  { %p736_p4 = scmp.eq.f32.partialorder %s735_s14, inf }
 0xc8d   :  { %p737_p5 = por %p736_p4, %p734_p3 }
 0xc8f   :  { %s1355_s12 = smov (%p737_p5, %s794_s12), 2.0 }
 0xc90   :  { %s739_s17 = smax.f32 %s868_s16, %s1355_s12 }
 0xc91   :  { %s740_s20 = smin.f32 %s869_s18, %s739_s17 }
 0xc92   :  { %s743_s21 = sadd.f32 %s742_s15, %s740_s20 }
 0xc94   :  { %745 = sst [smem:[#allocation2]] %s743_s21 }
 0xc95   :  { %753 = dma.smem_to_hbm %s870_s22, 16, %s1342_s3, [#allocation3]  }
 0xc96   :  { %850 = dma.done.wait [#allocation3], 16  }
 0xc97   :  { %851 = vsyncadd [#allocation3], 4294967280 }
 0xc98   :  { %757 = sfence }
 0xc99   :  { %758 = vsyncpa [#allocation3], 1 }

</bundles_post_ra>
